<compile_context>
chip_gen: v6e
topology: v6e:2x2x1
jax: 0.10.0
libtpu: 0.0.40
codegen_flags: <defaults>
</compile_context>

<pallas_src>
import math

import jax
import jax.numpy as jnp
from jax.experimental import pallas as pl
from jax.experimental.pallas import tpu as pltpu


def _make_a_kernel(num_layers):
    """Builds the fused kernel for a stack of `num_layers` L-layers."""

    def kernel(*refs):
        x_ref = refs[0]                                   # (B, Nb, d0)
        w_refs = refs[1:1 + num_layers]                   # (Nb, I_l, O_l)
        b_refs = refs[1 + num_layers:1 + 2 * num_layers]  # (Nb, O_l)
        o_ref = refs[1 + 2 * num_layers]                  # (B, Nb, d_last)

        h = x_ref[...].astype(jnp.float32)
        for l in range(num_layers):
            h = jax.nn.sigmoid(h)
            w = w_refs[l][...].astype(jnp.float32)
            b = b_refs[l][...].astype(jnp.float32)
            # Batched (over the Nb "linear" axis) matmul with f32 accumulation.
            h = jnp.einsum("bni,nio->bno", h, w,
                           preferred_element_type=jnp.float32)
            h = h + b[None, :, :]
        o_ref[...] = h.astype(o_ref.dtype)

    return kernel


def _choose_block_n(num_linear, batch, dims, itemsize):
    """Pick how many 'linears' to process per grid step."""
    if num_linear <= 8:
        return num_linear
    # Bytes per linear held in one grid step (weights dominate).
    per_n = sum(dims[l] * dims[l + 1] for l in range(len(dims) - 1))  # weights
    per_n += sum(dims[1:])                                            # biases
    per_n += batch * (dims[0] + dims[-1])                             # x + out rows
    per_n_bytes = max(per_n * itemsize, 1)
    # Keep double-buffered blocks within a conservative ~16 MiB budget.
    nb = (16 * 1024 * 1024) // (2 * per_n_bytes)
    nb = max(8, (nb // 8) * 8)
    # Keep at least two grid blocks so both v7x TensorCores get work.
    half = max(8, (((num_linear + 1) // 2) // 8) * 8)
    return int(min(nb, half, num_linear))


def a_forward(x, weights, biases, *, block_n=None):
    """Forward pass of module A.

    x:       (B, N, d0)
    weights: list of (N, d_l, d_{l+1})
    biases:  list of (N, d_{l+1})
    returns: (B, N, d_last)
    """
    num_layers = len(weights)
    assert num_layers >= 1 and num_layers == len(biases)
    B, N, d0 = x.shape
    dims = [int(d0)] + [int(w.shape[2]) for w in weights]
    for l, (w, b) in enumerate(zip(weights, biases)):
        assert w.shape == (N, dims[l], dims[l + 1])
        assert b.shape == (N, dims[l + 1])
    d_last = dims[-1]

    itemsize = jnp.dtype(x.dtype).itemsize
    nb = block_n if block_n is not None else _choose_block_n(N, B, dims, itemsize)
    nb = int(min(nb, N))
    grid = (pl.cdiv(N, nb),)

    in_specs = [pl.BlockSpec((B, nb, dims[0]), lambda n: (0, n, 0))]
    for l in range(num_layers):
        in_specs.append(
            pl.BlockSpec((nb, dims[l], dims[l + 1]), lambda n: (n, 0, 0)))
    for l in range(num_layers):
        in_specs.append(pl.BlockSpec((nb, dims[l + 1]), lambda n: (n, 0)))
    out_spec = pl.BlockSpec((B, nb, d_last), lambda n: (0, n, 0))

    # Scoped VMEM: double-buffered blocks + headroom, capped for v7x (64 MiB phys).
    block_bytes = itemsize * (
        B * nb * dims[0] + B * nb * d_last
        + sum(nb * dims[l] * dims[l + 1] for l in range(num_layers))
        + sum(nb * dims[l + 1] for l in range(num_layers)))
    vmem_limit = int(min(max(4 * block_bytes + (8 << 20), 32 << 20), 48 << 20))

    return pl.pallas_call(
        _make_a_kernel(num_layers),
        out_shape=jax.ShapeDtypeStruct((B, N, d_last), x.dtype),
        grid_spec=pltpu.PrefetchScalarGridSpec(
            num_scalar_prefetch=0,
            grid=grid,
            in_specs=in_specs,
            out_specs=out_spec,
        ),
        compiler_params=pltpu.CompilerParams(
            dimension_semantics=("parallel",),
            vmem_limit_bytes=vmem_limit,
        ),
    )(x, *weights, *biases)


def init_params(key, dim, dtype=jnp.float32):
    """Matches A.__init__ / L.reset_parameters: uniform(-sqrt(1/I), sqrt(1/I))."""
    num_linear = dim[0]
    weights, biases = [], []
    for i in range(len(dim) - 2):
        in_f, out_f = dim[i + 1], dim[i + 2]
        bound = math.sqrt(1.0 / in_f)
        key, kw, kb = jax.random.split(key, 3)
        weights.append(jax.random.uniform(
            kw, (num_linear, in_f, out_f), minval=-bound, maxval=bound, dtype=dtype))
        biases.append(jax.random.uniform(
            kb, (num_linear, out_f), minval=-bound, maxval=bound, dtype=dtype))
    return weights, biases


if __name__ == "__main__":
    batch = 2
    dim = (16, 32, 64, 32)   # (num_linear, d0, d1, d2) -> two L layers

    key = jax.random.PRNGKey(0)
    kx, kp = jax.random.split(key)
    x = jax.random.normal(kx, (batch, dim[0], dim[1]), dtype=jnp.float32)
    weights, biases = init_params(kp, dim)

    out = a_forward(x, weights, biases)
    out = jax.block_until_ready(out)

    # Pure-JAX reference with identical semantics to A.forward.
    ref = x
    for w, b in zip(weights, biases):
        ref = jax.nn.sigmoid(ref)
        ref = jnp.einsum("bni,nio->bno", ref, w) + b[None, :, :]

    assert out.shape == (batch, dim[0], dim[-1])
    err = float(jnp.max(jnp.abs(out - ref)))
    assert jnp.allclose(out, ref, atol=1e-4, rtol=1e-4), err

    print("KERNEL_OK")
</pallas_src>

<mosaic_0001>
module attributes {stable_mosaic.version = 11 : i64} {
  func.func @kernel(%arg0: i32, %arg1: memref<2x8x32xf32, #tpu.memory_space<vmem>>, %arg2: memref<8x32x64xf32, #tpu.memory_space<vmem>>, %arg3: memref<8x64x32xf32, #tpu.memory_space<vmem>>, %arg4: memref<8x64xf32, #tpu.memory_space<vmem>>, %arg5: memref<8x32xf32, #tpu.memory_space<vmem>>, %arg6: memref<2x8x32xf32, #tpu.memory_space<vmem>>) attributes {dimension_semantics = [#tpu.dimension_semantics<parallel>], iteration_bounds = array<i64: 2>, scalar_prefetch = 0 : i64, scratch_operands = 0 : i64, tpu.core_type = #tpu.core_type<tc>, window_params = [{transform_indices = @transform_0, window_bounds = array<i64: 2, 8, 32>}, {transform_indices = @transform_1, window_bounds = array<i64: 8, 32, 64>}, {transform_indices = @transform_2, window_bounds = array<i64: 8, 64, 32>}, {transform_indices = @transform_3, window_bounds = array<i64: 8, 64>}, {transform_indices = @transform_4, window_bounds = array<i64: 8, 32>}, {transform_indices = @transform_5, window_bounds = array<i64: 2, 8, 32>}]} {
    %c0 = arith.constant 0 : index
    %c0_0 = arith.constant 0 : index
    %c0_1 = arith.constant 0 : index
    %0 = vector.load %arg1[%c0, %c0_0, %c0_1] : memref<2x8x32xf32, #tpu.memory_space<vmem>>, vector<2x8x32xf32>
    %1 = arith.negf %0 : vector<2x8x32xf32>
    %2 = math.exp %1 : vector<2x8x32xf32>
    %cst = arith.constant 1.000000e+00 : f32
    %3 = vector.broadcast %cst : f32 to vector<2x8x32xf32>
    %4 = arith.addf %3, %2 : vector<2x8x32xf32>
    %5 = arith.divf %3, %4 : vector<2x8x32xf32>
    %c0_2 = arith.constant 0 : index
    %c0_3 = arith.constant 0 : index
    %c0_4 = arith.constant 0 : index
    %6 = vector.load %arg2[%c0_2, %c0_3, %c0_4] : memref<8x32x64xf32, #tpu.memory_space<vmem>>, vector<8x32x64xf32>
    %c0_5 = arith.constant 0 : index
    %c0_6 = arith.constant 0 : index
    %7 = vector.load %arg4[%c0_5, %c0_6] : memref<8x64xf32, #tpu.memory_space<vmem>>, vector<8x64xf32>
    "tpu.trace_start"() <{level = 10 : i32, message = "bni,nio->bno"}> : () -> ()
    %cst_7 = arith.constant dense<0.000000e+00> : vector<8x64x2xf32>
    %8 = tpu.matmul %6, %5, %cst_7 {dimension_numbers = #tpu.dot_dimension_numbers<[1], [2], [2], [0], [0, 0, 0, 2, 1, 0], [0], [1]>} : vector<8x32x64xf32>, vector<2x8x32xf32>, vector<8x64x2xf32> -> vector<8x64x2xf32>
    %9 = tpu.transpose %8, [2, 0, 1] : vector<8x64x2xf32> -> vector<2x8x64xf32>
    "tpu.trace_stop"() : () -> ()
    %10 = vector.shape_cast %7 : vector<8x64xf32> to vector<1x8x64xf32>
    %11 = vector.broadcast %10 : vector<1x8x64xf32> to vector<2x8x64xf32>
    %12 = arith.addf %9, %11 : vector<2x8x64xf32>
    %13 = arith.negf %12 : vector<2x8x64xf32>
    %14 = math.exp %13 : vector<2x8x64xf32>
    %cst_8 = arith.constant 1.000000e+00 : f32
    %15 = vector.broadcast %cst_8 : f32 to vector<2x8x64xf32>
    %16 = arith.addf %15, %14 : vector<2x8x64xf32>
    %17 = arith.divf %15, %16 : vector<2x8x64xf32>
    %c0_9 = arith.constant 0 : index
    %c0_10 = arith.constant 0 : index
    %c0_11 = arith.constant 0 : index
    %18 = vector.load %arg3[%c0_9, %c0_10, %c0_11] : memref<8x64x32xf32, #tpu.memory_space<vmem>>, vector<8x64x32xf32>
    %c0_12 = arith.constant 0 : index
    %c0_13 = arith.constant 0 : index
    %19 = vector.load %arg5[%c0_12, %c0_13] : memref<8x32xf32, #tpu.memory_space<vmem>>, vector<8x32xf32>
    "tpu.trace_start"() <{level = 10 : i32, message = "bni,nio->bno"}> : () -> ()
    %cst_14 = arith.constant dense<0.000000e+00> : vector<8x32x2xf32>
    %20 = tpu.matmul %18, %17, %cst_14 {dimension_numbers = #tpu.dot_dimension_numbers<[1], [2], [2], [0], [0, 0, 0, 2, 1, 0], [0], [1]>} : vector<8x64x32xf32>, vector<2x8x64xf32>, vector<8x32x2xf32> -> vector<8x32x2xf32>
    %21 = tpu.transpose %20, [2, 0, 1] : vector<8x32x2xf32> -> vector<2x8x32xf32>
    "tpu.trace_stop"() : () -> ()
    %22 = vector.shape_cast %19 : vector<8x32xf32> to vector<1x8x32xf32>
    %23 = vector.broadcast %22 : vector<1x8x32xf32> to vector<2x8x32xf32>
    %24 = arith.addf %21, %23 : vector<2x8x32xf32>
    %c0_15 = arith.constant 0 : index
    %c0_16 = arith.constant 0 : index
    %c0_17 = arith.constant 0 : index
    %25 = vector.load %arg6[%c0_15, %c0_16, %c0_17] : memref<2x8x32xf32, #tpu.memory_space<vmem>>, vector<2x8x32xf32>
    tpu.vector_store %arg6[%c0_15, %c0_16, %c0_17], %24 {strides = array<i32>} : memref<2x8x32xf32, #tpu.memory_space<vmem>>, vector<2x8x32xf32>,
    return
  }
  func.func @transform_0(%arg0: i32) -> (i32, i32, i32) {
    %c0_i32 = arith.constant 0 : i32
    %c0_i32_0 = arith.constant 0 : i32
    %c0_i32_1 = arith.constant 0 : i32
    return %c0_i32, %arg0, %c0_i32_0 : i32, i32, i32
  }
  func.func @transform_1(%arg0: i32) -> (i32, i32, i32) {
    %c0_i32 = arith.constant 0 : i32
    %c0_i32_0 = arith.constant 0 : i32
    %c0_i32_1 = arith.constant 0 : i32
    return %arg0, %c0_i32, %c0_i32_0 : i32, i32, i32
  }
  func.func @transform_2(%arg0: i32) -> (i32, i32, i32) {
    %c0_i32 = arith.constant 0 : i32
    %c0_i32_0 = arith.constant 0 : i32
    %c0_i32_1 = arith.constant 0 : i32
    return %arg0, %c0_i32, %c0_i32_0 : i32, i32, i32
  }
  func.func @transform_3(%arg0: i32) -> (i32, i32) {
    %c0_i32 = arith.constant 0 : i32
    %c0_i32_0 = arith.constant 0 : i32
    return %arg0, %c0_i32 : i32, i32
  }
  func.func @transform_4(%arg0: i32) -> (i32, i32) {
    %c0_i32 = arith.constant 0 : i32
    %c0_i32_0 = arith.constant 0 : i32
    return %arg0, %c0_i32 : i32, i32
  }
  func.func @transform_5(%arg0: i32) -> (i32, i32, i32) {
    %c0_i32 = arith.constant 0 : i32
    %c0_i32_0 = arith.constant 0 : i32
    %c0_i32_1 = arith.constant 0 : i32
    return %c0_i32, %arg0, %c0_i32_0 : i32, i32, i32
  }
}

</mosaic_0001>

<bundles_post_ra>
// kernel: tpu_custom_call.1
= control target key start
LH: loop header
LB: loop body
LE: loop exit
PB: predicated region body
PF: predicated region fallthrough
CT: control target
= control target key end

     0   :  { %10 = vsyncpa [#allocation4], 0  ;;  %s11443_s0 = inlined_call_operand.vmem [shape: f32[2,16,32], index: 0, kind: input, shape index: {}]   ;;  %s11444_s1 = inlined_call_operand.vmem [shape: f32[16,32,64], index: 1, kind: input, shape index: {}]   ;;  %s11445_s2 = inlined_call_operand.vmem [shape: f32[16,64,32], index: 2, kind: input, shape index: {}]   ;;  %s11446_s3 = inlined_call_operand.vmem [shape: f32[16,64], index: 3, kind: input, shape index: {}]   ;;  %s11447_s4 = inlined_call_operand.vmem [shape: f32[16,32], index: 4, kind: input, shape index: {}]   ;;  %s11448_s5 = inlined_call_operand.hbm [shape: f32[2,16,32], index: 5, kind: output, shape index: {}]  }
   0x1   :  { %12 = vsyncpa [#allocation4 + $0x1], 0  ;;  %s9973_s18 = smov 0   ;;  %s9975_s19 = smov 0  }
   0x2   :  { %s9977_s20 = smov 0   ;;  %s9979_s21 = smov 0  }
   0x3 LB: > { %s9994_s22 = sadd.s32 4294967295, %s9934_s21   ;;  %s9163_s23 = sadd.s32 4294967294, %s9934_s21   ;;  %s9934_s21 = sphi %s9979_s21, %s11608_s21   ;;  %s9930_s20 = sphi %s9977_s20, %s11607_s20   ;;  %s9926_s19 = sphi %s9975_s19, %s11606_s19   ;;  %s9922_s18 = sphi %s9973_s18, %s11605_s18  }
   0x4   : > { %s9998_s24 = sadd.s32 1, %s9934_s21   ;;  %s25_s25 = sadd.s32 1, %s9930_s20 }
   0x5   : > { %s22_s26 = ssub.s32 %s9934_s21, %s9998_s24  ;;  %p32_p0 = scmp.ne.s32.totalorder %s9930_s20, %s9926_s19 }
   0x6   : > { %p23_p1 = scmp.eq.s32.totalorder %s22_s26, 0  ;;  %p33_p2 = scmp.eq.s32.totalorder %s9934_s21, 0 }
   0x7   : > { %p166_p3 = scmp.eq.s32.totalorder %s9994_s22, 1  ;;  %p171_p4 = scmp.ne.s32.totalorder %s9926_s19, %s9922_s18 }
   0x8   : > { %s10010_s27 = scalar_select %p23_p1, %s9930_s20, %s25_s25  }
   0x9   : > { %p34_p5 = por %p33_p2, %p32_p0  ;;  %p10012_p6 = por %p166_p3, %p32_p0 }
   0xa   : > { %p172_p7 = scmp.eq.s32.totalorder %s9163_s23, 1  ;;  %p9165_p9 = scmp.ge.s32.totalorder %s9934_s21, 2 }
   0xc   : > { %p10016_p8 = por %p172_p7, %p171_p4  ;;  %188 = sbr.rel (%p9165_p9) target bundleno = 22 (0x16), region = 16 }
  0x11   : > { %191 = sbr.rel (!%p34_p5) target bundleno = 22 (0x16), region = 20  ;;  %s193_s30 = sand.u32 (%p34_p5), 1, %s9930_s20  }
  0x12   : > { %s9167_s6 = sshll.u32 (%p34_p5), %s9934_s21, 3  ;;  %s9166_s7 = sshll.u32 (%p34_p5), %s193_s30, 4 }
  0x13   : > { %s197_s10 = scalar_lea.vmem (%p34_p5), %s11443_s0, %s9167_s6  ;;  %s195_s11 = scalar_lea.vmem (%p34_p5), [#allocation2], %s9166_s7 }
  0x14   : > { %v228_v0 = vld [vmem:[%s197_s10] sm:$0xff] (%p34_p5)  ;;  %v230_v1 = vld [vmem:[%s197_s10 + $0x10] sm:$0xff] (%p34_p5) }
  0x15   : > { %229 = vst [vmem:[%s195_s11] sm:$0xff] (%p34_p5), %v228_v0  ;;  %231 = vst [vmem:[%s195_s11 + $0x8] sm:$0xff] (%p34_p5), %v230_v1 }
  0x16 PF: > { %p9168_p10 = scmp.ge.s32.totalorder %s9934_s21, 1  ;;  %p270_p11 = scmp.lt.s32.totalorder %s9934_s21, 3 }
  0x18   : > { %p271_p12 = pnand %p9168_p10, %p270_p11 }
  0x1a   : > { %274 = sbr.rel (%p271_p12) target bundleno = 1708 (0x6ac), region = 74 }
  0x1f   : > { %s9171_s12 = sshll.u32 %s9994_s22, 3  ;;  %s277_s13 = sand.u32 1, %s9926_s19   ;;  %vm2321_vm0 = vcmask 261120   ;;  %v9936_v31 = vmov 1983009808   ;;  %v461_v33 = vlaneseq  ;;  %v11449_v44 = vmov 0.0  }
  0x20   : > { %p325_p13 = scmp.lt.s32.totalorder %s9171_s12, 15  ;;  %s10034_s14 = sshll.u32 %s277_s13, 4  ;;  %v459_v32 = vunpack.c.l.s4 %v9936_v31  ;;  %v9937_v35 = vmov 1934713408   ;;  %vm7723_vm1 = vcmask 523264  }
  0x21   : > { %s279_s15 = scalar_lea.vmem [#allocation2], %s10034_s14  ;;  %v490_v36 = vunpack.c.l.s4 %v9937_v35  ;;  %v462_v38 = vshrl.u32 %v461_v33, 7  ;;  %p338_p0 = scmp.lt.s32.totalorder %s9994_s22, 1 }
  0x22   : > { %s11610_s12 = smov (!%p325_p13, %s9171_s12), 15  ;;  %v346_v2 = vld [vmem:[%s279_s15] sm:$0xff]  ;;  %v347_v5 = vld [vmem:[%s279_s15 + $0x8] sm:$0xff]  ;;  %v460_v37 = vunpack.c.0.s8 %v459_v32  ;;  %s9280_s23 = sshll.u32 %s9994_s22, 7 }
  0x23   : > { %v9179_v3 = vmul.f32 -1.442695, %v346_v2  ;;  %s9283_s16 = sshll.u32 %s11610_s12, 5  ;;  %v9180_v7 = vmul.f32 -1.442695, %v347_v5  ;;  %v491_v40 = vunpack.c.0.s8 %v490_v36  ;;  %s9284_s26 = sshll.u32 %s11610_s12, 6 }
  0x24   : > { %s10043_s25 = scalar_lea.vmem %s11444_s1, %s9283_s16  ;;  %v10073_v41 = vsub.s32 %v460_v37, %v462_v38  ;;  %s10255_s7 = scalar_lea.vmem %s11445_s2, %s9284_s26 }
  0x25   : > { %9858 = vpow2.f32 %v9179_v3  ;;  %v364_v4 = vld [vmem:[%s10043_s25 + $0x20] sm:$0xff]  ;;  %v365_v6 = vld [vmem:[%s10043_s25 + $0x28] sm:$0xff]  ;;  %v366_v8 = vld [vmem:[%s10043_s25 + $0x30] sm:$0xff]  ;;  %v10075_v43 = vsub.s32 %v491_v40, %v462_v38  ;;  %s10676_s8 = scalar_select %p338_p0, %s9994_s22, 1 }
  0x26   : > { %2451 = vxpose.xlu0.b32.start [1/4] (short) (narrow) %v364_v4, 64  ;;  %9860 = vpow2.f32 %v9180_v7  ;;  %v367_v9 = vld [vmem:[%s10043_s25 + $0x38] sm:$0xff]  ;;  %v360_v12 = vld [vmem:[%s10043_s25] sm:$0xff]  ;;  %v361_v14 = vld [vmem:[%s10043_s25 + $0x8] sm:$0xff]  ;;  %s11402_s22 = scalar_lea.sflag [#allocation4], %s277_s13 }
  0x27   : > { %2289 = vxpose.xlu1.b32.start [1/4] (short) (narrow) %v360_v12, 64  ;;  %v362_v16 = vld [vmem:[%s10043_s25 + $0x10] sm:$0xff]  ;;  %v363_v18 = vld [vmem:[%s10043_s25 + $0x18] sm:$0xff]  ;;  %s9177_s9 = sshll.u32 %s10676_s8, 3  ;;  %s9939_s8 = smov [#allocation3]  }
  0x28   : > { %s341_s12 = scalar_lea.vmem %s11446_s3, %s9177_s9  ;;  %s345_s17 = scalar_lea.vmem %s11447_s4, %s9177_s9 }
  0x29   : > { %s9878_s9 = sshll.u32 %s9939_s8, 4  ;;  %s9879_s9 = int_to_ptr.vmem [resolvable:$false] %s9878_s9 }
  0x2a   : > { %2452 = vxpose.xlu0.b32.cont [2/4] (short) (narrow) %v365_v6, 64  ;;  %s9880_s10 = scalar_lea.vmem %s9879_s9, 512 }
  0x2b   : > { %2290 = vxpose.xlu1.b32.cont [2/4] (short) (narrow) %v361_v14, 64 }
  0x2e   : > { %2453 = vxpose.xlu0.b32.cont [3/4] (short) (narrow) %v366_v8, 64 }
  0x2f   : > { %2291 = vxpose.xlu1.b32.cont [3/4] (short) (narrow) %v362_v16, 64 }
  0x32   : > { %v9859_v10 = vpop.eup %9858  ;;  %2454 = vxpose.xlu0.b32.end [4/4] (short) (narrow) %v367_v9, 64 }
  0x33   : > { %v354_v11 = vadd.f32 1.0, %v9859_v10  ;;  %v9861_v13 = vpop.eup %9860  ;;  %2292 = vxpose.xlu1.b32.end [4/4] (short) (narrow) %v363_v18, 64 }
  0x34   : > { %v355_v15 = vadd.f32 1.0, %v9861_v13 }
  0x35   : > { %9862 = vrcp.f32 %v354_v11 }
  0x36   : > { %9864 = vrcp.f32 %v355_v15 }
  0x42   : > { %v9863_v17 = vpop.eup %9862 }
  0x43   : > { %393 = vxpose.xlu0.b32.start.end [1/1] (short) (narrow) %v9863_v17, 32  ;;  %v9865_v19 = vpop.eup %9864 }
  0x50   : > { %425 = vxpose.xlu0.b32.start.end [1/1] (short) (narrow) %v9865_v19, 32 }
  0xa2   : > { %v2467_v20 = vpop.trf.xlu0 }
  0xa3   : > { %9505 = vmatprep.mubr.msk.f32.mxu1 %vm2321_vm0, %v2467_v20  ;;  %v2305_v25 = vpop.trf.xlu1 }
  0xa4   : > { %9485 = vmatprep.mubr.msk.f32.mxu0 %vm2321_vm0, %v2305_v25 }
  0xa6   : > { %v10054_v21 = vpop.trf.xlu0 }
  0xaa   : > { %v10056_v22 = vpop.trf.xlu0 }
  0xae   : > { %v10058_v23 = vpop.trf.xlu0 }
  0xb2   : > { %v10060_v24 = vpop.trf.xlu0 }
  0xb6   : > { %v10063_v26 = vpop.trf.xlu0 }
  0xba   : > { %v10065_v27 = vpop.trf.xlu0 }
  0xbb   : > { %11495 = vst [vmem:[#allocation6_spill] sm:$0xff] %v10065_v27 }
  0xbe   : > { %v10067_v28 = vpop.trf.xlu0 }
  0xbf   : > { %11496 = vst [vmem:[#allocation7_spill] sm:$0xff] %v10067_v28 }
  0xc2   : > { %v409_v29 = vpop.trf.xlu0 }
  0xc3   : > { %v457_v45 = vcombine.high %v409_v29, %v11449_v44  ;;  %v464_v46 = vrot.slane %v409_v29, %v10073_v41 }
  0xc5   : > { %v471_v53 = vrot.slane %v457_v45, %v10073_v41 }
  0xc6   : > { %v410_v30 = vpop.trf.xlu0 }
  0xc7   : > { %v530_v62 = vrot.slane %v410_v30, %v10073_v41  ;;  %v523_v3 = vcombine.high %v410_v30, %v11449_v44 }
  0xc9   : > { %v537_v8 = vrot.slane %v523_v3, %v10073_v41  ;;  %v375_v3 = vld [vmem:[%s10043_s25 + $0x78] sm:$0xff] }
  0xca   : > { %v10069_v34 = vpop.trf.xlu0 }
  0xcb   : > { %v596_v17 = vrot.slane %v10069_v34, %v10073_v41  ;;  %v589_v29 = vcombine.high %v10069_v34, %v11449_v44 }
  0xcd   : > { %v603_v36 = vrot.slane %v589_v29, %v10073_v41  ;;  %v378_v29 = vld [vmem:[%s10043_s25 + $0x90] sm:$0xff] }
  0xce   : > { %v10071_v39 = vpop.trf.xlu0 }
  0xd2   : > { %v441_v42 = vpop.trf.xlu0 }
  0xd3   : > { %v472_v47 = vcombine.high %v441_v42, %v11449_v44  ;;  %v479_v48 = vrot.slane %v441_v42, %v10073_v41  ;;  %v655_v42 = vcombine.high %v10071_v39, %v11449_v44 }
  0xd5   : > { %v486_v49 = vrot.slane %v472_v47, %v10073_v41  ;;  %v487_v50 = vcombine.low %v464_v46, %v479_v48  ;;  %v488_v51 = vcombine.high %v464_v46, %v479_v48 }
  0xd6   : > { %v442_v57 = vpop.trf.xlu0 }
  0xd7   : > { %v495_v52 = vrot.slane %v487_v50, %v10075_v43  ;;  %v502_v55 = vrot.slane %v488_v51, %v10075_v43  ;;  %v503_v56 = vcombine.low %v471_v53, %v486_v49  ;;  %v545_v58 = vrot.slane %v442_v57, %v10073_v41 }
  0xd8   : > { %v504_v61 = vcombine.high %v471_v53, %v486_v49  ;;  %v538_v63 = vcombine.high %v442_v57, %v11449_v44  ;;  %v669_v49 = vrot.slane %v655_v42, %v10073_v41  ;;  %v662_v51 = vrot.slane %v10071_v39, %v10073_v41 }
  0xd9   : > { %721 = vxpose.xlu1.b32.start.end [1/1] (short) (narrow) %v495_v52, 8  ;;  %v519_v54 = vcombine.high %v495_v52, %v11449_v44  ;;  %v520_v59 = vcombine.high %v502_v55, %v11449_v44  ;;  %v511_v60 = vrot.slane %v503_v56, %v10075_v43  ;;  %v553_v2 = vcombine.low %v530_v62, %v545_v58 }
  0xda   : > { %v518_v1 = vrot.slane %v504_v61, %v10075_v43  ;;  %v552_v4 = vrot.slane %v538_v63, %v10073_v41  ;;  %v554_v7 = vcombine.high %v530_v62, %v545_v58  ;;  %v443_v12 = vpop.trf.xlu0  ;;  %v372_v61 = vld [vmem:[%s10043_s25 + $0x60] sm:$0xff]  ;;  %v373_v63 = vld [vmem:[%s10043_s25 + $0x68] sm:$0xff] }
  0xdb   : > { %753 = vxpose.xlu0.b32.start.end [1/1] (short) (narrow) %v519_v54, 8  ;;  %v521_v0 = vcombine.high %v511_v60, %v11449_v44  ;;  %v561_v6 = vrot.slane %v553_v2, %v10075_v43  ;;  %v611_v13 = vrot.slane %v443_v12, %v10073_v41  ;;  %v604_v18 = vcombine.high %v443_v12, %v11449_v44  ;;  %v371_v12 = vld [vmem:[%s10043_s25 + $0x58] sm:$0xff] }
  0xdc   : > { %v522_v5 = vcombine.high %v518_v1, %v11449_v44  ;;  %v568_v10 = vrot.slane %v554_v7, %v10075_v43  ;;  %v569_v11 = vcombine.low %v537_v8, %v552_v4  ;;  %v570_v16 = vcombine.high %v537_v8, %v552_v4  ;;  %v369_v7 = vld [vmem:[%s10043_s25 + $0x48] sm:$0xff]  ;;  %v380_v8 = vld [vmem:[%s10043_s25 + $0xa0] sm:$0xff] }
  0xdd   : > { %785 = vxpose.xlu1.b32.start.end [1/1] (short) (narrow) %v502_v55, 8  ;;  %v585_v9 = vcombine.high %v561_v6, %v11449_v44  ;;  %v619_v25 = vcombine.low %v596_v17, %v611_v13  ;;  %v618_v30 = vrot.slane %v604_v18, %v10073_v41  ;;  %v620_v33 = vcombine.high %v596_v17, %v611_v13  ;;  %v376_v18 = vld [vmem:[%s10043_s25 + $0x80] sm:$0xff] }
  0xde   : > { %v586_v14 = vcombine.high %v568_v10, %v11449_v44  ;;  %v577_v15 = vrot.slane %v569_v11, %v10075_v43  ;;  %v584_v20 = vrot.slane %v570_v16, %v10075_v43  ;;  %v444_v35 = vpop.trf.xlu0  ;;  %v381_v11 = vld [vmem:[%s10043_s25 + $0xa8] sm:$0xff] }
  0xdf   : > { %817 = vxpose.xlu0.b32.start.end [1/1] (short) (narrow) %v520_v59, 8  ;;  %v627_v32 = vrot.slane %v619_v25, %v10075_v43  ;;  %v670_v37 = vcombine.high %v444_v35, %v11449_v44  ;;  %v634_v34 = vrot.slane %v620_v33, %v10075_v43  ;;  %v635_v40 = vcombine.low %v603_v36, %v618_v30  ;;  %v388_v25 = vld [vmem:[%s10043_s25 + $0xe0] sm:$0xff]  ;;  %v390_v33 = vld [vmem:[%s10043_s25 + $0xf0] sm:$0xff] }
  0xe0   : > { %v587_v19 = vcombine.high %v577_v15, %v11449_v44  ;;  %v588_v31 = vcombine.high %v584_v20, %v11449_v44  ;;  %v636_v48 = vcombine.high %v603_v36, %v618_v30  ;;  %v677_v50 = vrot.slane %v444_v35, %v10073_v41  ;;  %v391_v36 = vld [vmem:[%s10043_s25 + $0xf8] sm:$0xff] }
  0xe1   : > { %849 = vxpose.xlu1.b32.start.end [1/1] (short) (narrow) %v511_v60, 8  ;;  %v651_v38 = vcombine.high %v627_v32, %v11449_v44  ;;  %v684_v45 = vrot.slane %v670_v37, %v10073_v41  ;;  %v652_v46 = vcombine.high %v634_v34, %v11449_v44  ;;  %v643_v47 = vrot.slane %v635_v40, %v10075_v43 }
  0xe2   : > { %v650_v53 = vrot.slane %v636_v48, %v10075_v43  ;;  %v685_v55 = vcombine.low %v662_v51, %v677_v50  ;;  %v686_v39 = vcombine.high %v662_v51, %v677_v50  ;;  %v385_v48 = vld [vmem:[%s10043_s25 + $0xc8] sm:$0xff] }
  0xe3   : > { %881 = vxpose.xlu0.b32.start.end [1/1] (short) (narrow) %v521_v0, 8  ;;  %v653_v52 = vcombine.high %v643_v47, %v11449_v44  ;;  %v701_v54 = vcombine.low %v669_v49, %v684_v45  ;;  %v702_v2 = vcombine.high %v669_v49, %v684_v45  ;;  %v384_v45 = vld [vmem:[%s10043_s25 + $0xc0] sm:$0xff] }
  0xe4   : > { %v654_v56 = vcombine.high %v650_v53, %v11449_v44  ;;  %v693_v58 = vrot.slane %v685_v55, %v10075_v43  ;;  %v700_v60 = vrot.slane %v686_v39, %v10075_v43 }
  0xe5   : > { %913 = vxpose.xlu1.b32.start.end [1/1] (short) (narrow) %v518_v1, 8  ;;  %v709_v57 = vrot.slane %v701_v54, %v10075_v43  ;;  %v374_v1 = vld [vmem:[%s10043_s25 + $0x70] sm:$0xff]  ;;  %v716_v4 = vrot.slane %v702_v2, %v10075_v43 }
  0xe6   : > { %v717_v62 = vcombine.high %v693_v58, %v11449_v44  ;;  %v718_v0 = vcombine.high %v700_v60, %v11449_v44 }
  0xe7   : > { %945 = vxpose.xlu0.b32.start.end [1/1] (short) (narrow) %v522_v5, 8  ;;  %v719_v59 = vcombine.high %v709_v57, %v11449_v44  ;;  %v720_v5 = vcombine.high %v716_v4, %v11449_v44 }
  0xe9   : > { %977 = vxpose.xlu1.b32.start.end [1/1] (short) (narrow) %v561_v6, 8  ;;  %v368_v6 = vld [vmem:[%s10043_s25 + $0x40] sm:$0xff] }
  0xeb   : > { %1009 = vxpose.xlu0.b32.start.end [1/1] (short) (narrow) %v585_v9, 8  ;;  %v370_v9 = vld [vmem:[%s10043_s25 + $0x50] sm:$0xff] }
  0xed   : > { %1041 = vxpose.xlu1.b32.start.end [1/1] (short) (narrow) %v568_v10, 8  ;;  %v10145_v10 = vpop.trf.xlu1 }
  0xef   : > { %1073 = vxpose.xlu0.b32.start.end [1/1] (short) (narrow) %v586_v14, 8  ;;  %v382_v14 = vld [vmem:[%s10043_s25 + $0xb0] sm:$0xff] }
  0xf1   : > { %1105 = vxpose.xlu1.b32.start.end [1/1] (short) (narrow) %v577_v15, 8  ;;  %v10149_v13 = vpop.trf.xlu1  ;;  %v383_v15 = vld [vmem:[%s10043_s25 + $0xb8] sm:$0xff] }
  0xf3   : > { %1137 = vxpose.xlu0.b32.start.end [1/1] (short) (narrow) %v587_v19, 8 }
  0xf5   : > { %1169 = vxpose.xlu1.b32.start.end [1/1] (short) (narrow) %v584_v20, 8  ;;  %v10153_v16 = vpop.trf.xlu1  ;;  %v377_v20 = vld [vmem:[%s10043_s25 + $0x88] sm:$0xff] }
  0xf7   : > { %1201 = vxpose.xlu0.b32.start.end [1/1] (short) (narrow) %v588_v31, 8  ;;  %v389_v31 = vld [vmem:[%s10043_s25 + $0xe8] sm:$0xff] }
  0xf9   : > { %1233 = vxpose.xlu1.b32.start.end [1/1] (short) (narrow) %v627_v32, 8  ;;  %v10155_v17 = vpop.trf.xlu1  ;;  %v379_v32 = vld [vmem:[%s10043_s25 + $0x98] sm:$0xff] }
  0xfb   : > { %1265 = vxpose.xlu0.b32.start.end [1/1] (short) (narrow) %v651_v38, 8 }
  0xfd   : > { %1297 = vxpose.xlu1.b32.start.end [1/1] (short) (narrow) %v634_v34, 8  ;;  %v10158_v19 = vpop.trf.xlu1 }
  0xff   : > { %1329 = vxpose.xlu0.b32.start.end [1/1] (short) (narrow) %v652_v46, 8 }
 0x101   : > { %1361 = vxpose.xlu1.b32.start.end [1/1] (short) (narrow) %v643_v47, 8  ;;  %v10163_v30 = vpop.trf.xlu1 }
 0x103   : > { %1393 = vxpose.xlu0.b32.start.end [1/1] (short) (narrow) %v653_v52, 8 }
 0x105   : > { %1425 = vxpose.xlu1.b32.start.end [1/1] (short) (narrow) %v650_v53, 8  ;;  %v10168_v35 = vpop.trf.xlu1 }
 0x106   : > { %11497 = vst [vmem:[#allocation8_spill] sm:$0xff] %v10168_v35 }
 0x107   : > { %1457 = vxpose.xlu0.b32.start.end [1/1] (short) (narrow) %v654_v56, 8  ;;  %v386_v56 = vld [vmem:[%s10043_s25 + $0xd0] sm:$0xff] }
 0x109   : > { %1489 = vxpose.xlu1.b32.start.end [1/1] (short) (narrow) %v693_v58, 8 }
 0x10b   : > { %1649 = vxpose.xlu0.b32.start.end [1/1] (short) (narrow) %v719_v59, 8 }
 0x10d   : > { %1553 = vxpose.xlu1.b32.start.end [1/1] (short) (narrow) %v700_v60, 8 }
 0x10f   : > { %2773 = vxpose.xlu0.b32.start [1/4] (short) (narrow) %v372_v61, 64 }
 0x111   : > { %1521 = vxpose.xlu1.b32.start.end [1/1] (short) (narrow) %v717_v62, 8 }
 0x113   : > { %2774 = vxpose.xlu0.b32.cont [2/4] (short) (narrow) %v373_v63, 64 }
 0x115   : > { %1585 = vxpose.xlu1.b32.start.end [1/1] (short) (narrow) %v718_v0, 8  ;;  %v387_v0 = vld [vmem:[%s10043_s25 + $0xd8] sm:$0xff]  ;;  %s323_s25 = scalar_lea.vmem [#allocation3], %s10034_s14 }
 0x116   : > { %s9047_s26 = sshll.u32 %s323_s25, 4  ;;  %s11396_s26 = int_to_ptr.vmem [resolvable:$true] %s9047_s26 }
 0x117   : > { %2775 = vxpose.xlu0.b32.cont [3/4] (short) (narrow) %v374_v1, 64  ;;  %s9874_s14 = scalar_lea.vmem %s11396_s26, 256  ;;  %p9881_p4 = scmp.lt.s32.totalorder %s11396_s26, %s9879_s9 }
 0x118   : > { %p9875_p1 = scmp.ne.s32.totalorder %s11396_s26, %s9874_s14  ;;  %p9882_p5 = scmp.lt.s32.totalorder %s9880_s10, %s9874_s14 }
 0x119   : > { %1617 = vxpose.xlu1.b32.start.end [1/1] (short) (narrow) %v709_v57, 8 }
 0x11a   : > { %p9876_p2 = pnand %p9875_p1, %p10012_p6  ;;  %p9883_p7 = por %p9882_p5, %p9881_p4 }
 0x11b   : > { %2776 = vxpose.xlu0.b32.end [4/4] (short) (narrow) %v375_v3, 64 }
 0x11c   : > { %p9877_p3 = pneg %p9876_p2 }
 0x11d   : > { %1681 = vxpose.xlu1.b32.start.end [1/1] (short) (narrow) %v716_v4, 8 }
 0x11e   : > { %p9884_p10 = pnand %p9883_p7, %p9877_p3 }
 0x121   : > { %1713 = vxpose.xlu1.b32.start.end [1/1] (short) (narrow) %v720_v5, 8 }
 0x125   : > { %2612 = vxpose.xlu1.b32.start [1/4] (short) (narrow) %v368_v6, 64 }
 0x129   : > { %2613 = vxpose.xlu1.b32.cont [2/4] (short) (narrow) %v369_v7, 64 }
 0x12c   : > { %3095 = vxpose.xlu0.b32.start [1/4] (short) (narrow) %v380_v8, 64 }
 0x12d   : > { %2614 = vxpose.xlu1.b32.cont [3/4] (short) (narrow) %v370_v9, 64 }
 0x130   : > { %3096 = vxpose.xlu0.b32.cont [2/4] (short) (narrow) %v381_v11, 64 }
 0x131   : > { %2615 = vxpose.xlu1.b32.end [4/4] (short) (narrow) %v371_v12, 64 }
 0x134   : > { %3097 = vxpose.xlu0.b32.cont [3/4] (short) (narrow) %v382_v14, 64 }
 0x138   : > { %3098 = vxpose.xlu0.b32.end [4/4] (short) (narrow) %v383_v15, 64 }
 0x142   : > { %2934 = vxpose.xlu1.b32.start [1/4] (short) (narrow) %v376_v18, 64 }
 0x146   : > { %2935 = vxpose.xlu1.b32.cont [2/4] (short) (narrow) %v377_v20, 64 }
 0x149   : > { %3417 = vxpose.xlu0.b32.start [1/4] (short) (narrow) %v388_v25, 64 }
 0x14a   : > { %2936 = vxpose.xlu1.b32.cont [3/4] (short) (narrow) %v378_v29, 64 }
 0x14d   : > { %3418 = vxpose.xlu0.b32.cont [2/4] (short) (narrow) %v389_v31, 64 }
 0x14e   : > { %2937 = vxpose.xlu1.b32.end [4/4] (short) (narrow) %v379_v32, 64 }
 0x151   : > { %3419 = vxpose.xlu0.b32.cont [3/4] (short) (narrow) %v390_v33, 64 }
 0x155   : > { %v10171_v37 = vpop.trf.xlu1  ;;  %3420 = vxpose.xlu0.b32.end [4/4] (short) (narrow) %v391_v36, 64 }
 0x157   : > { %v10173_v38 = vpop.trf.xlu0 }
 0x159   : > { %v10175_v34 = vpop.trf.xlu1 }
 0x15a   : > { %v1746_v50 = vcombine.high %v10171_v37, %v10175_v34 }
 0x15b   : > { %v10177_v40 = vpop.trf.xlu0 }
 0x15c   : > { %v1762_v42 = vcombine.high %v10173_v38, %v10177_v40  ;;  %v1760_v58 = vrot.slane %v1746_v50, %v10073_v41 }
 0x15d   : > { %v10182_v46 = vpop.trf.xlu1 }
 0x15e   : > { %v1776_v54 = vrot.slane %v1762_v42, %v10073_v41 }
 0x15f   : > { %v10184_v47 = vpop.trf.xlu0  ;;  %3256 = vxpose.xlu1.b32.start [1/4] (short) (narrow) %v384_v45, 64 }
 0x160   : > { %v1825_v61 = vcombine.low %v1760_v58, %v1776_v54  ;;  %v1826_v1 = vcombine.high %v1760_v58, %v1776_v54 }
 0x161   : > { %v10187_v49 = vpop.trf.xlu1 }
 0x162   : > { %v1778_v52 = vcombine.high %v10182_v46, %v10187_v49  ;;  %v1833_v7 = vrot.slane %v1825_v61, %v10075_v43  ;;  %v1840_v9 = vrot.slane %v1826_v1, %v10075_v43 }
 0x163   : > { %v10195_v53 = vpop.trf.xlu0  ;;  %3257 = vxpose.xlu1.b32.cont [2/4] (short) (narrow) %v385_v48, 64 }
 0x164   : > { %v1794_v55 = vcombine.high %v10184_v47, %v10195_v53  ;;  %v1792_v39 = vrot.slane %v1778_v52, %v10073_v41 }
 0x165   : > { %v10201_v57 = vpop.trf.xlu1 }
 0x166   : > { %v1808_v59 = vrot.slane %v1794_v55, %v10073_v41 }
 0x167   : > { %v10206_v60 = vpop.trf.xlu0  ;;  %3258 = vxpose.xlu1.b32.cont [3/4] (short) (narrow) %v386_v56, 64 }
 0x168   : > { %v1857_v62 = vcombine.low %v1792_v39, %v1808_v59  ;;  %v1858_v63 = vcombine.high %v1792_v39, %v1808_v59 }
 0x169   : > { %v10209_v2 = vpop.trf.xlu1 }
 0x16a   : > { %v1882_v3 = vcombine.high %v10201_v57, %v10209_v2  ;;  %v1865_v5 = vrot.slane %v1857_v62, %v10075_v43  ;;  %v1872_v6 = vrot.slane %v1858_v63, %v10075_v43 }
 0x16b   : > { %v10213_v4 = vpop.trf.xlu0  ;;  %3259 = vxpose.xlu1.b32.end [4/4] (short) (narrow) %v387_v0, 64 }
 0x16c   : > { %v10221_v11 = vcombine.low %v1833_v7, %v1865_v5  ;;  %v10223_v12 = vcombine.high %v1833_v7, %v1865_v5  ;;  %v10227_v15 = vcombine.low %v1840_v9, %v1872_v6  ;;  %v10229_v18 = vcombine.high %v1840_v9, %v1872_v6  ;;  %v3898_v5 = vld [vmem:[%s10255_s7] sm:$0xff] }
 0x16d   : > { %v10218_v8 = vpop.trf.xlu1  ;;  %v1898_v20 = vcombine.high %v10206_v60, %v10213_v4  ;;  %v1896_v42 = vrot.slane %v1882_v3, %v10073_v41  ;;  %v3906_v6 = vld [vmem:[%s10255_s7 + $0x40] sm:$0xff] }
 0x16e   : > { %11498 = vst [vmem:[#allocation9_spill] sm:$0xff] %v10221_v11  ;;  %11499 = vst [vmem:[#allocation10_spill] sm:$0xff] %v10223_v12  ;;  %7821 = vxpose.xlu0.b32.start [1/8] (short) (narrow) %v3906_v6, 32  ;;  %v1897_v12 = vcombine.low %v10206_v60, %v10213_v4  ;;  %v1745_v60 = vcombine.low %v10171_v37, %v10175_v34  ;;  %v1761_v4 = vcombine.low %v10173_v38, %v10177_v40 }
 0x16f   : > { %v10225_v14 = vpop.trf.xlu0  ;;  %11500 = vst [vmem:[#allocation11_spill] sm:$0xff] %v10227_v15  ;;  %11501 = vst [vmem:[#allocation12_spill] sm:$0xff] %v10229_v18  ;;  %v1912_v32 = vrot.slane %v1898_v20, %v10073_v41  ;;  %v3905_v18 = vld [vmem:[%s10255_s7 + $0x38] sm:$0xff] }
 0x170   : > { %v3913_v15 = vld [vmem:[%s10255_s7 + $0x78] sm:$0xff]  ;;  %v10373_v34 = vrot.slane %v1897_v12, %v10073_v41  ;;  %v10390_v12 = vrot.slane %v1761_v4, %v10073_v41  ;;  %v10408_v4 = vrot.slane %v1745_v60, %v10073_v41 }
 0x171   : > { %v10233_v25 = vpop.trf.xlu1  ;;  %v1961_v52 = vcombine.low %v1896_v42, %v1912_v32  ;;  %v1962_v56 = vcombine.high %v1896_v42, %v1912_v32  ;;  %v3907_v32 = vld [vmem:[%s10255_s7 + $0x48] sm:$0xff] }
 0x172   : > { %v1914_v29 = vcombine.high %v10218_v8, %v10233_v25  ;;  %7822 = vxpose.xlu0.b32.cont [2/8] (short) (narrow) %v3907_v32, 32  ;;  %v3911_v32 = vld [vmem:[%s10255_s7 + $0x68] sm:$0xff] }
 0x173   : > { %v10237_v31 = vpop.trf.xlu0  ;;  %v1969_v62 = vrot.slane %v1961_v52, %v10075_v43  ;;  %v1976_v0 = vrot.slane %v1962_v56, %v10075_v43  ;;  %v3909_v56 = vld [vmem:[%s10255_s7 + $0x58] sm:$0xff] }
 0x174   : > { %v1930_v33 = vcombine.high %v10225_v14, %v10237_v31  ;;  %v1928_v45 = vrot.slane %v1914_v29, %v10073_v41  ;;  %v3899_v29 = vld [vmem:[%s10255_s7 + $0x8] sm:$0xff] }
 0x175   : > { %v10242_v36 = vpop.trf.xlu1 }
 0x176   : > { %v1944_v48 = vrot.slane %v1930_v33, %v10073_v41 }
 0x177   : > { %v10247_v50 = vpop.trf.xlu0 }
 0x178   : > { %v1993_v54 = vcombine.low %v1928_v45, %v1944_v48  ;;  %v1994_v55 = vcombine.high %v1928_v45, %v1944_v48  ;;  %v3900_v45 = vld [vmem:[%s10255_s7 + $0x10] sm:$0xff] }
 0x179   : > { %v10250_v58 = vpop.trf.xlu1  ;;  %v3908_v48 = vld [vmem:[%s10255_s7 + $0x50] sm:$0xff] }
 0x17a   : > { %v2001_v59 = vrot.slane %v1993_v54, %v10075_v43  ;;  %v2008_v61 = vrot.slane %v1994_v55, %v10075_v43  ;;  %7823 = vxpose.xlu0.b32.cont [3/8] (short) (narrow) %v3908_v48, 32  ;;  %v3901_v55 = vld [vmem:[%s10255_s7 + $0x18] sm:$0xff] }
 0x17b   : > { %v10257_v39 = vpop.trf.xlu0 }
 0x17c   : > { %v10265_v1 = vcombine.low %v1969_v62, %v2001_v59  ;;  %v10267_v3 = vcombine.high %v1969_v62, %v2001_v59  ;;  %v10273_v9 = vcombine.low %v1976_v0, %v2008_v61  ;;  %v10275_v20 = vcombine.high %v1976_v0, %v2008_v61  ;;  %7691 = vxpose.xlu1.b32.start [1/8] (short) (narrow) %v3898_v5, 32  ;;  %v3902_v62 = vld [vmem:[%s10255_s7 + $0x20] sm:$0xff] }
 0x17d   : > { %v10262_v63 = vpop.trf.xlu1  ;;  %v3910_v0 = vld [vmem:[%s10255_s7 + $0x60] sm:$0xff] }
 0x17e   : > { %11502 = vst [vmem:[#allocation13_spill] sm:$0xff] %v10265_v1  ;;  %11503 = vst [vmem:[#allocation14_spill] sm:$0xff] %v10267_v3  ;;  %7824 = vxpose.xlu0.b32.cont [4/8] (short) (narrow) %v3909_v56, 32  ;;  %v3912_v56 = vld [vmem:[%s10255_s7 + $0x70] sm:$0xff] }
 0x17f   : > { %v10271_v7 = vpop.trf.xlu0  ;;  %11504 = vst [vmem:[#allocation15_spill] sm:$0xff] %v10273_v9  ;;  %11505 = vst [vmem:[#allocation16_spill] sm:$0xff] %v10275_v20  ;;  %v1793_v20 = vcombine.low %v10184_v47, %v10195_v53 }
 0x180   : > { %7692 = vxpose.xlu1.b32.cont [2/8] (short) (narrow) %v3899_v29, 32  ;;  %v3903_v29 = vld [vmem:[%s10255_s7 + $0x28] sm:$0xff] }
 0x181   : > { %v10279_v33 = vpop.trf.xlu1  ;;  %v10370_v38 = vrot.slane %v1793_v20, %v10073_v41 }
 0x182   : > { %7825 = vxpose.xlu0.b32.cont [5/8] (short) (narrow) %v3910_v0, 32 }
 0x183   : > { %v10281_v42 = vpop.trf.xlu0 }
 0x184   : > { %7693 = vxpose.xlu1.b32.cont [3/8] (short) (narrow) %v3900_v45, 32 }
 0x185   : > { %v10285_v52 = vpop.trf.xlu1 }
 0x186   : > { %7826 = vxpose.xlu0.b32.cont [6/8] (short) (narrow) %v3911_v32, 32 }
 0x187   : > { %v10287_v54 = vpop.trf.xlu0 }
 0x188   : > { %7694 = vxpose.xlu1.b32.cont [4/8] (short) (narrow) %v3901_v55, 32  ;;  %v3904_v55 = vld [vmem:[%s10255_s7 + $0x30] sm:$0xff] }
 0x189   : > { %v10291_v59 = vpop.trf.xlu1 }
 0x18a   : > { %7827 = vxpose.xlu0.b32.cont [7/8] (short) (narrow) %v3912_v56, 32  ;;  %v2049_v56 = vcombine.low %v10262_v63, %v10279_v33  ;;  %v2153_v9 = vcombine.low %v10285_v52, %v10291_v59 }
 0x18b   : > { %v10293_v61 = vpop.trf.xlu0 }
 0x18c   : > { %11506 = vst [vmem:[#allocation17_spill] sm:$0xff] %v10293_v61  ;;  %7695 = vxpose.xlu1.b32.cont [5/8] (short) (narrow) %v3902_v62, 32  ;;  %v2065_v62 = vcombine.low %v10271_v7, %v10281_v42 }
 0x18d   : > { %v10297_v5 = vpop.trf.xlu1 }
 0x18e   : > { %7828 = vxpose.xlu0.b32.end [8/8] (short) (narrow) %v3913_v15, 32  ;;  %v10340_v47 = vrot.slane %v2065_v62, %v10073_v41  ;;  %v10362_v62 = vrot.slane %v2049_v56, %v10073_v41  ;;  %v11512_v56 = vcombine.low %v10182_v46, %v10187_v49 }
 0x18f   : > { %v10299_v6 = vpop.trf.xlu0 }
 0x190   : > { %11507 = vst [vmem:[#allocation18_spill] sm:$0xff] %v10299_v6  ;;  %7696 = vxpose.xlu1.b32.cont [6/8] (short) (narrow) %v3903_v29, 32  ;;  %v1929_v29 = vcombine.low %v10225_v14, %v10237_v31  ;;  %v1913_v14 = vcombine.low %v10218_v8, %v10233_v25  ;;  %v2017_v31 = vcombine.low %v10242_v36, %v10250_v58 }
 0x191   : > { %v10303_v45 = vpop.trf.xlu1  ;;  %v1881_v8 = vcombine.low %v10201_v57, %v10209_v2 }
 0x192   : > { %v2169_v0 = vcombine.low %v10297_v5, %v10303_v45  ;;  %v10354_v15 = vrot.slane %v1929_v29, %v10073_v41  ;;  %v10376_v40 = vrot.slane %v1913_v14, %v10073_v41  ;;  %v10379_v57 = vrot.slane %v2017_v31, %v10073_v41 }
 0x193   : > { %v10305_v48 = vpop.trf.xlu0  ;;  %v10396_v14 = vrot.slane %v11512_v56, %v10073_v41 }
 0x194   : > { %11508 = vst [vmem:[#allocation19_spill] sm:$0xff] %v10305_v48  ;;  %7697 = vxpose.xlu1.b32.cont [7/8] (short) (narrow) %v3904_v55, 32  ;;  %v2033_v55 = vcombine.low %v10247_v50, %v10257_v39  ;;  %v10343_v53 = vrot.slane %v2169_v0, %v10073_v41  ;;  %v10365_v0 = vrot.slane %v2153_v9, %v10073_v41 }
 0x195   : > { %v10309_v44 = vpop.trf.xlu1  ;;  %v2113_v9 = vcombine.low %v10362_v62, %v10340_v47  ;;  %v1841_v46 = vcombine.low %v10396_v14, %v10370_v38  ;;  %v1809_v48 = vcombine.low %v10408_v4, %v10390_v12 }
 0x196   : > { %v10359_v25 = vrot.slane %v2033_v55, %v10073_v41  ;;  %v2217_v20 = vcombine.low %v10365_v0, %v10343_v53 }
 0x197   : > { %v10311_v51 = vpop.trf.xlu0  ;;  %v2121_v1 = vrot.slane %v2113_v9, %v10075_v43  ;;  %v1849_v35 = vrot.slane %v1841_v46, %v10075_v43 }
 0x198   : > { %11509 = vst [vmem:[#allocation20_spill] sm:$0xff] %v10311_v51  ;;  %7698 = vxpose.xlu1.b32.end [8/8] (short) (narrow) %v3905_v18, 32 }
 0x199   : > { %v10321_v32 = vpop.trf.xlu1 }
 0x19a   : > { %v2185_v51 = vcombine.low %v10309_v44, %v10321_v32 }
 0x19b   : > { %v10337_v11 = vpop.trf.xlu0 }
 0x19c   : > { %11510 = vst [vmem:[#allocation21_spill] sm:$0xff] %v10337_v11  ;;  %v2193_v29 = vrot.slane %v2185_v51, %v10073_v41  ;;  %v1977_v51 = vcombine.low %v10376_v40, %v10354_v15 }
 0x19d   : > { %v10356_v18 = vpop.trf.xlu1 }
 0x19e   : > { %v2201_v37 = vcombine.low %v10287_v54, %v10356_v18 }
 0x19f   : > { %v10381_v2 = vpop.trf.xlu0 }
 0x1a0   : > { %11511 = vst [vmem:[#allocation22_spill] sm:$0xff] %v10381_v2  ;;  %v2209_v55 = vrot.slane %v2201_v37, %v10073_v41  ;;  %v10401_v2 = vrot.slane %v1881_v8, %v10073_v41  ;;  %v2081_v37 = vcombine.low %v10379_v57, %v10359_v25  ;;  %v2225_v8 = vrot.slane %v2217_v20, %v10075_v43 }
 0x1a1   : > { %v10398_v31 = vpop.trf.xlu1 }
 0x1a2   : > { %11513 = vst [vmem:[#allocation23_spill] sm:$0xff] %v10398_v31  ;;  %v2249_v11 = vcombine.low %v2193_v29, %v2209_v55  ;;  %v1945_v56 = vcombine.low %v10401_v2, %v10373_v34  ;;  %v2089_v31 = vrot.slane %v2081_v37, %v10075_v43  ;;  %v2250_v28 = vcombine.high %v2193_v29, %v2209_v55 }
 0x1a3   : > { %v10412_v49 = vpop.trf.xlu0  ;;  %v1817_v29 = vrot.slane %v1809_v48, %v10075_v43  ;;  %v2202_v37 = vcombine.high %v10287_v54, %v10356_v18  ;;  %v1978_v48 = vcombine.high %v10376_v40, %v10354_v15  ;;  %v2186_v54 = vcombine.high %v10309_v44, %v10321_v32 }
 0x1a4   : > { %11514 = vst [vmem:[#allocation24_spill] sm:$0xff] %v10412_v49  ;;  %v2257_v3 = vrot.slane %v2249_v11, %v10075_v43  ;;  %v1985_v49 = vrot.slane %v1977_v51, %v10075_v43  ;;  %v2145_v11 = vcombine.low %v2089_v31, %v2121_v1  ;;  %v2146_v9 = vcombine.high %v2089_v31, %v2121_v1 }
 0x1a5   : > { %v10421_v6 = vpop.trf.xlu1  ;;  %v1953_v20 = vrot.slane %v1945_v56, %v10075_v43  ;;  %v2114_v51 = vcombine.high %v10362_v62, %v10340_v47  ;;  %v2082_v47 = vcombine.high %v10379_v57, %v10359_v25  ;;  %v1874_v62 = vcombine.high %v1817_v29, %v1849_v35 }
 0x1a6   : > { %11515 = vst [vmem:[#allocation25_spill] sm:$0xff] %v10421_v6  ;;  %v2281_v60 = vcombine.low %v2225_v8, %v2257_v3  ;;  %v2282_v61 = vcombine.high %v2225_v8, %v2257_v3  ;;  %v1842_v6 = vcombine.high %v10396_v14, %v10370_v38  ;;  %v2218_v3 = vcombine.high %v10365_v0, %v10343_v53 }
 0x1a7   : > { %v10426_v27 = vpop.trf.xlu0  ;;  %v2009_v1 = vcombine.low %v1953_v20, %v1985_v49  ;;  %v2010_v31 = vcombine.high %v1953_v20, %v1985_v49  ;;  %v1873_v38 = vcombine.low %v1817_v29, %v1849_v35  ;;  %v2264_v53 = vrot.slane %v2250_v28, %v10075_v43 }
 0x1a8   : > { %9477 = vmatprep.subr.mxu0 %v2281_v60  ;;  %9497 = vmatprep.subr.mxu1 %v2282_v61  ;;  %v2170_v0 = vcombine.high %v10297_v5, %v10303_v45  ;;  %v2232_v28 = vrot.slane %v2218_v3, %v10075_v43  ;;  %v1946_v15 = vcombine.high %v10401_v2, %v10373_v34 }
 0x1a9   : > { %9478 = vmatpush3.msra.mxu0 %v2281_v60  ;;  %9498 = vmatpush3.msra.mxu1 %v2282_v61  ;;  %v10434_v55 = vpop.trf.xlu1  ;;  %v2154_v25 = vcombine.high %v10285_v52, %v10291_v59  ;;  %v2128_v35 = vrot.slane %v2114_v51, %v10075_v43  ;;  %v10460_v5 = vrot.slane %v2202_v37, %v10073_v41 }
 0x1aa   : > { %9479 = vmatprep.subr.mxu0 %v2145_v11  ;;  %9499 = vmatprep.subr.mxu1 %v2146_v9  ;;  %v2283_v44 = vcombine.low %v2232_v28, %v2264_v53  ;;  %v2284_v45 = vcombine.high %v2232_v28, %v2264_v53  ;;  %v1810_v40 = vcombine.high %v10408_v4, %v10390_v12  ;;  %v11519_v53 = vld [vmem:[#allocation23_spill] sm:$0xff] }
 0x1ab   : > { %9480 = vmatpush3.msra.mxu0 %v2145_v11  ;;  %9500 = vmatpush3.msra.mxu1 %v2146_v9  ;;  %v10441_v61 = vpop.trf.xlu0  ;;  %v2096_v52 = vrot.slane %v2082_v47, %v10075_v43  ;;  %v10472_v59 = vrot.slane %v2170_v0, %v10073_v41  ;;  %v10475_v34 = vrot.slane %v2186_v54, %v10073_v41  ;;  %v11522_v54 = vld [vmem:[#allocation18_spill] sm:$0xff] }
 0x1ac   : > { %9481 = vmatprep.subr.mxu0 %v2009_v1  ;;  %9501 = vmatprep.subr.mxu1 %v2010_v31  ;;  %v1992_v57 = vrot.slane %v1978_v48, %v10075_v43  ;;  %v1856_v12 = vrot.slane %v1842_v6, %v10075_v43  ;;  %v10486_v14 = vrot.slane %v2154_v25, %v10073_v41  ;;  %v11520_v48 = vld [vmem:[#allocation17_spill] sm:$0xff] }
 0x1ad   : > { %9482 = vmatpush3.msra.mxu0 %v2009_v1  ;;  %9502 = vmatpush3.msra.mxu1 %v2010_v31  ;;  %v10452_v18 = vpop.trf.xlu1  ;;  %v2265_v4 = vcombine.low %v10475_v34, %v10460_v5  ;;  %v1960_v46 = vrot.slane %v1946_v15, %v10075_v43  ;;  %v2034_v11 = vcombine.high %v10247_v50, %v10257_v39  ;;  %v11516_v31 = vld [vmem:[#allocation6_spill] sm:$0xff]  ;;  %v11521_v0 = vld [vmem:[#allocation25_spill] sm:$0xff] }
 0x1ae   : > { %9483 = vmatprep.subr.mxu0 %v1873_v38  ;;  %9503 = vmatprep.subr.mxu1 %v1874_v62  ;;  %v2233_v6 = vcombine.low %v10486_v14, %v10472_v59  ;;  %v2050_v9 = vcombine.high %v10262_v63, %v10279_v33  ;;  %v2018_v3 = vcombine.high %v10242_v36, %v10250_v58 }
 0x1af   : > { %9484 = vmatpush3.msra.mxu0 %v1873_v38  ;;  %9504 = vmatpush3.msra.mxu1 %v1874_v62  ;;  %v10462_v32 = vpop.trf.xlu0  ;;  %v2011_v56 = vcombine.low %v1960_v46, %v1992_v57  ;;  %v2012_v8 = vcombine.high %v1960_v46, %v1992_v57  ;;  %v10524_v63 = vrot.slane %v2034_v11, %v10073_v41  ;;  %v11517_v38 = vld [vmem:[#allocation8_spill] sm:$0xff]  ;;  %v11529_v46 = vld [vmem:[#allocation21_spill] sm:$0xff] }
 0x1b0   : > { %9486 = vmatmul.mubr.msk.f32.vlgmr.msra.gmra.mxu0 %vm2321_vm0, %v10145_v10  ;;  %9506 = vmatmul.mubr.msk.f32.vlgmr.msra.gmra.mxu1 %vm2321_vm0, %v10054_v21  ;;  %v2147_v21 = vcombine.low %v2096_v52, %v2128_v35  ;;  %v2148_v10 = vcombine.high %v2096_v52, %v2128_v35  ;;  %v10527_v36 = vrot.slane %v2050_v9, %v10073_v41  ;;  %v11524_v52 = vld [vmem:[#allocation13_spill] sm:$0xff] }
 0x1b1   : > { %9517 = vmatprep.subr.mxu0 %v2283_v44  ;;  %9537 = vmatprep.subr.mxu1 %v2284_v45  ;;  %v10478_v2 = vpop.trf.xlu1  ;;  %v10532_v33 = vrot.slane %v2018_v3, %v10073_v41  ;;  %v2266_v25 = vcombine.high %v10475_v34, %v10460_v5  ;;  %v11525_v5 = vld [vmem:[#allocation14_spill] sm:$0xff] }
 0x1b2   : > { %9488 = vmatprep.mubr.msk.f32.mxu0 %vm2321_vm0, %v10149_v13  ;;  %9508 = vmatprep.mubr.msk.f32.mxu1 %vm2321_vm0, %v10056_v22  ;;  %v2066_v13 = vcombine.high %v10271_v7, %v10281_v42  ;;  %v1824_v22 = vrot.slane %v1810_v40, %v10075_v43  ;;  %v2273_v42 = vrot.slane %v2265_v4, %v10075_v43  ;;  %v11523_v40 = vld [vmem:[#allocation19_spill] sm:$0xff] }
 0x1b3   : > { %9518 = vmatpush3.msra.mxu0 %v2283_v44  ;;  %9538 = vmatpush3.msra.mxu1 %v2284_v45  ;;  %v10491_v49 = vpop.trf.xlu0  ;;  %v2097_v1 = vcombine.low %v10532_v33, %v10524_v63  ;;  %v2234_v44 = vcombine.high %v10486_v14, %v10472_v59  ;;  %v2280_v34 = vrot.slane %v2266_v25, %v10075_v43  ;;  %v11526_v59 = vld [vmem:[#allocation20_spill] sm:$0xff] }
 0x1b4   : > { %9519 = vmatprep.subr.mxu0 %v2147_v21  ;;  %9539 = vmatprep.subr.mxu1 %v2148_v10  ;;  %v1875_v7 = vcombine.low %v1824_v22, %v1856_v12  ;;  %v10514_v50 = vrot.slane %v2066_v13, %v10073_v41 }
 0x1b5   : > { %9520 = vmatpush3.msra.mxu0 %v2147_v21  ;;  %9540 = vmatpush3.msra.mxu1 %v2148_v10  ;;  %v10498_v60 = vpop.trf.xlu1  ;;  %v2105_v47 = vrot.slane %v2097_v1, %v10075_v43  ;;  %v11527_v21 = vld [vmem:[#allocation9_spill] sm:$0xff]  ;;  %v11528_v10 = vld [vmem:[#allocation10_spill] sm:$0xff] }
 0x1b6   : > { %9489 = vmatmul.mubr.msk.f32.gmra.mxu0 %vm2321_vm0, %v10153_v16  ;;  %9509 = vmatmul.mubr.msk.f32.gmra.mxu1 %vm2321_vm0, %v10058_v23  ;;  %v1876_v23 = vcombine.high %v1824_v22, %v1856_v12  ;;  %v2241_v16 = vrot.slane %v2233_v6, %v10075_v43  ;;  %v2129_v29 = vcombine.low %v10527_v36, %v10514_v50  ;;  %v11530_v22 = vld [vmem:[#allocation22_spill] sm:$0xff]  ;;  %v11531_v6 = vld [vmem:[#allocation24_spill] sm:$0xff] }
 0x1b7   : > { %9521 = vmatprep.subr.mxu0 %v2011_v56  ;;  %9541 = vmatprep.subr.mxu1 %v2012_v8  ;;  %v10509_v20 = vpop.trf.xlu0  ;;  %v2130_v13 = vcombine.high %v10527_v36, %v10514_v50  ;;  %v11532_v50 = vld [vmem:[#allocation15_spill] sm:$0xff] }
 0x1b8   : > { %9491 = vmatprep.mubr.msk.f32.mxu0 %vm2321_vm0, %v10155_v17  ;;  %9511 = vmatprep.mubr.msk.f32.mxu1 %vm2321_vm0, %v10060_v24  ;;  %v2285_v17 = vcombine.low %v2241_v16, %v2273_v42  ;;  %v2286_v58 = vcombine.high %v2241_v16, %v2273_v42  ;;  %v11535_v16 = vld [vmem:[#allocation12_spill] sm:$0xff] }
 0x1b9   : > { %9522 = vmatpush3.msra.mxu0 %v2011_v56  ;;  %9542 = vmatpush3.msra.mxu1 %v2012_v8  ;;  %v10521_v39 = vpop.trf.xlu1  ;;  %v2098_v56 = vcombine.high %v10532_v33, %v10524_v63 }
 0x1ba   : > { %9523 = vmatprep.subr.mxu0 %v1875_v7  ;;  %9543 = vmatprep.subr.mxu1 %v1876_v23 }
 0x1bb   : > { %9524 = vmatpush3.msra.mxu0 %v1875_v7  ;;  %9544 = vmatpush3.msra.mxu1 %v1876_v23  ;;  %v10529_v24 = vpop.trf.xlu0  ;;  %v2112_v9 = vrot.slane %v2098_v56, %v10075_v43 }
 0x1bc   : > { %9492 = vmatmul.mubr.msk.f32.gmra.mxu0 %vm2321_vm0, %v10158_v19  ;;  %9512 = vmatmul.mubr.msk.f32.gmra.mxu1 %vm2321_vm0, %v10063_v26  ;;  %v11518_v19 = vld [vmem:[#allocation7_spill] sm:$0xff]  ;;  %v2137_v26 = vrot.slane %v2129_v29, %v10075_v43 }
 0x1bd   : > { %9557 = vmatprep.subr.mxu0 %v2285_v17  ;;  %9577 = vmatprep.subr.mxu1 %v2286_v58  ;;  %v2635_v51 = vpop.trf.xlu1 }
 0x1be   : > { %9494 = vmatprep.mubr.msk.f32.mxu0 %vm2321_vm0, %v10163_v30  ;;  %9514 = vmatprep.mubr.msk.f32.mxu1 %vm2321_vm0, %v11516_v31  ;;  %v2149_v28 = vcombine.low %v2105_v47, %v2137_v26  ;;  %v2150_v15 = vcombine.high %v2105_v47, %v2137_v26 }
 0x1bf   : > { %v10546_v37 = vpop.trf.xlu0 }
 0x1c0   : > { %9495 = vmatmul.mubr.msk.f32.gmra.mxu0 %vm2321_vm0, %v11517_v38  ;;  %9515 = vmatmul.mubr.msk.f32.gmra.mxu1 %vm2321_vm0, %v11518_v19 }
 0x1c1   : > { %9525 = vmatprep.mubr.msk.f32.mxu0 %vm2321_vm0, %v11519_v53  ;;  %9545 = vmatprep.mubr.msk.f32.mxu1 %vm2321_vm0, %v11520_v48  ;;  %v2950_v30 = vpop.trf.xlu1 }
 0x1c3   : > { %v10558_v62 = vpop.trf.xlu0 }
 0x1c4   : > { %9526 = vmatmul.mubr.msk.f32.vlgmr.msra.gmra.mxu0 %vm2321_vm0, %v11521_v0  ;;  %9546 = vmatmul.mubr.msk.f32.vlgmr.msra.gmra.mxu1 %vm2321_vm0, %v11522_v54 }
 0x1c5   : > { %9558 = vmatpush3.msra.mxu0 %v2285_v17  ;;  %9578 = vmatpush3.msra.mxu1 %v2286_v58  ;;  %v2951_v35 = vpop.trf.xlu1 }
 0x1c6   : > { %9559 = vmatprep.subr.mxu0 %v2149_v28  ;;  %9579 = vmatprep.subr.mxu1 %v2150_v15 }
 0x1c7   : > { %9560 = vmatpush3.msra.mxu0 %v2149_v28  ;;  %9580 = vmatpush3.msra.mxu1 %v2150_v15  ;;  %v10568_v45 = vpop.trf.xlu0 }
 0x1c8   : > { %9528 = vmatprep.mubr.msk.f32.mxu0 %vm2321_vm0, %v10434_v55  ;;  %9548 = vmatprep.mubr.msk.f32.mxu1 %vm2321_vm0, %v11523_v40  ;;  %v2248_v55 = vrot.slane %v2234_v44, %v10075_v43 }
 0x1c9   : > { %9561 = vmatprep.subr.mxu0 %v11524_v52  ;;  %9581 = vmatprep.subr.mxu1 %v11525_v5  ;;  %v2952_v57 = vpop.trf.xlu1 }
 0x1ca   : > { %9529 = vmatmul.mubr.msk.f32.gmra.mxu0 %vm2321_vm0, %v10452_v18  ;;  %9549 = vmatmul.mubr.msk.f32.gmra.mxu1 %vm2321_vm0, %v11526_v59  ;;  %v2287_v18 = vcombine.low %v2248_v55, %v2280_v34  ;;  %v2288_v14 = vcombine.high %v2248_v55, %v2280_v34 }
 0x1cb   : > { %9562 = vmatpush3.msra.mxu0 %v11524_v52  ;;  %9582 = vmatpush3.msra.mxu1 %v11525_v5  ;;  %v10586_v12 = vpop.trf.xlu0 }
 0x1cc   : > { %9563 = vmatprep.subr.mxu0 %v11527_v21  ;;  %9583 = vmatprep.subr.mxu1 %v11528_v10 }
 0x1cd   : > { %9564 = vmatpush3.msra.mxu0 %v11527_v21  ;;  %9584 = vmatpush3.msra.mxu1 %v11528_v10  ;;  %v2953_v4 = vpop.trf.xlu1 }
 0x1ce   : > { %9531 = vmatprep.mubr.msk.f32.mxu0 %vm2321_vm0, %v10478_v2  ;;  %9551 = vmatprep.mubr.msk.f32.mxu1 %vm2321_vm0, %v11529_v46 }
 0x1cf   : > { %9597 = vmatprep.subr.mxu0 %v2287_v18  ;;  %9617 = vmatprep.subr.mxu1 %v2288_v14  ;;  %v3434_v8 = vpop.trf.xlu0 }
 0x1d0   : > { %9532 = vmatmul.mubr.msk.f32.gmra.mxu0 %vm2321_vm0, %v10498_v60  ;;  %9552 = vmatmul.mubr.msk.f32.gmra.mxu1 %vm2321_vm0, %v11530_v22  ;;  %v2144_v60 = vrot.slane %v2130_v13, %v10075_v43 }
 0x1d1   : > { %9534 = vmatprep.mubr.msk.f32.mxu0 %vm2321_vm0, %v10521_v39  ;;  %9554 = vmatprep.mubr.msk.f32.mxu1 %vm2321_vm0, %v11531_v6  ;;  %v2954_v2 = vpop.trf.xlu1 }
 0x1d2   : > { %v2151_v7 = vcombine.low %v2112_v9, %v2144_v60  ;;  %v2152_v42 = vcombine.high %v2112_v9, %v2144_v60 }
 0x1d3   : > { %v3435_v3 = vpop.trf.xlu0 }
 0x1d4   : > { %9535 = vmatmul.mubr.msk.f32.gmra.mxu0 %vm2321_vm0, %v2635_v51  ;;  %9555 = vmatmul.mubr.msk.f32.gmra.mxu1 %vm2321_vm0, %v10426_v27 }
 0x1d5   : > { %9565 = vmatprep.mubr.msk.f32.mxu0 %vm2321_vm0, %v2950_v30  ;;  %9585 = vmatprep.mubr.msk.f32.mxu1 %vm2321_vm0, %v10441_v61  ;;  %v2955_v11 = vpop.trf.xlu1  ;;  %v11533_v61 = vld [vmem:[#allocation16_spill] sm:$0xff] }
 0x1d7   : > { %v3436_v39 = vpop.trf.xlu0 }
 0x1d8   : > { %9566 = vmatmul.mubr.msk.f32.vlgmr.msra.gmra.mxu0 %vm2321_vm0, %v2951_v35  ;;  %9586 = vmatmul.mubr.msk.f32.vlgmr.msra.gmra.mxu1 %vm2321_vm0, %v10462_v32  ;;  %v11534_v32 = vld [vmem:[#allocation11_spill] sm:$0xff] }
 0x1d9   : > { %9598 = vmatpush3.msra.mxu0 %v2287_v18  ;;  %9618 = vmatpush3.msra.mxu1 %v2288_v14  ;;  %v2956_v27 = vpop.trf.xlu1 }
 0x1da   : > { %9599 = vmatprep.subr.mxu0 %v2151_v7  ;;  %9619 = vmatprep.subr.mxu1 %v2152_v42 }
 0x1db   : > { %9600 = vmatpush3.msra.mxu0 %v2151_v7  ;;  %9620 = vmatpush3.msra.mxu1 %v2152_v42  ;;  %v3437_v36 = vpop.trf.xlu0 }
 0x1dc   : > { %9601 = vmatprep.subr.mxu0 %v11532_v50  ;;  %9621 = vmatprep.subr.mxu1 %v11533_v61 }
 0x1dd   : > { %9602 = vmatpush3.msra.mxu0 %v11532_v50  ;;  %9622 = vmatpush3.msra.mxu1 %v11533_v61  ;;  %v2957_v23 = vpop.trf.xlu1 }
 0x1de   : > { %9603 = vmatprep.subr.mxu0 %v11534_v32  ;;  %9623 = vmatprep.subr.mxu1 %v11535_v16 }
 0x1df   : > { %9604 = vmatpush3.msra.mxu0 %v11534_v32  ;;  %9624 = vmatpush3.msra.mxu1 %v11535_v16 }
 0x1e0   : > { %9568 = vmatprep.mubr.msk.f32.mxu0 %vm2321_vm0, %v2952_v57  ;;  %9588 = vmatprep.mubr.msk.f32.mxu1 %vm2321_vm0, %v10491_v49 }
 0x1e1   : > { %9569 = vmatmul.mubr.msk.f32.gmra.mxu0 %vm2321_vm0, %v2953_v4  ;;  %9589 = vmatmul.mubr.msk.f32.gmra.mxu1 %vm2321_vm0, %v10509_v20  ;;  %v3272_v63 = vpop.trf.xlu1  ;;  %v3438_v20 = vpop.trf.xlu0 }
 0x1e2   : > { %9571 = vmatprep.mubr.msk.f32.mxu0 %vm2321_vm0, %v2954_v2  ;;  %9591 = vmatprep.mubr.msk.f32.mxu1 %vm2321_vm0, %v10529_v24 }
 0x1e5   : > { %9572 = vmatmul.mubr.msk.f32.gmra.mxu0 %vm2321_vm0, %v2955_v11  ;;  %9592 = vmatmul.mubr.msk.f32.gmra.mxu1 %vm2321_vm0, %v10546_v37  ;;  %v3273_v17 = vpop.trf.xlu1  ;;  %v3439_v24 = vpop.trf.xlu0 }
 0x1e6   : > { %9574 = vmatprep.mubr.msk.f32.mxu0 %vm2321_vm0, %v2956_v27  ;;  %9594 = vmatprep.mubr.msk.f32.mxu1 %vm2321_vm0, %v10558_v62 }
 0x1e9   : > { %9575 = vmatmul.mubr.msk.f32.gmra.mxu0 %vm2321_vm0, %v2957_v23  ;;  %9595 = vmatmul.mubr.msk.f32.gmra.mxu1 %vm2321_vm0, %v10568_v45  ;;  %v3274_v49 = vpop.trf.xlu1  ;;  %v3440_v51 = vpop.trf.xlu0 }
 0x1ea   : > { %9605 = vmatprep.mubr.msk.f32.mxu0 %vm2321_vm0, %v3272_v63  ;;  %9625 = vmatprep.mubr.msk.f32.mxu1 %vm2321_vm0, %v10586_v12 }
 0x1ed   : > { %9606 = vmatmul.mubr.msk.f32.vlgmr.msra.gmra.mxu0 %vm2321_vm0, %v3273_v17  ;;  %9626 = vmatmul.mubr.msk.f32.vlgmr.msra.gmra.mxu1 %vm2321_vm0, %v3434_v8  ;;  %v3275_v58 = vpop.trf.xlu1 }
 0x1ee   : > { %9608 = vmatprep.mubr.msk.f32.mxu0 %vm2321_vm0, %v3274_v49  ;;  %9628 = vmatprep.mubr.msk.f32.mxu1 %vm2321_vm0, %v3435_v3  ;;  %v7837_v38 = vpop.trf.xlu0 }
 0x1f1   : > { %9609 = vmatmul.mubr.msk.f32.gmra.mxu0 %vm2321_vm0, %v3275_v58  ;;  %9629 = vmatmul.mubr.msk.f32.gmra.mxu1 %vm2321_vm0, %v3436_v39  ;;  %v3276_v33 = vpop.trf.xlu1 }
 0x1f2   : > { %9611 = vmatprep.mubr.msk.f32.mxu0 %vm2321_vm0, %v3276_v33  ;;  %9631 = vmatprep.mubr.msk.f32.mxu1 %vm2321_vm0, %v3437_v36 }
 0x1f5   : > { %v3277_v29 = vpop.trf.xlu1  ;;  %9632 = vmatmul.mubr.msk.f32.gmra.mxu1 %vm2321_vm0, %v3438_v20 }
 0x1f6   : > { %9612 = vmatmul.mubr.msk.f32.gmra.mxu0 %vm2321_vm0, %v3277_v29  ;;  %9634 = vmatprep.mubr.msk.f32.mxu1 %vm2321_vm0, %v3439_v24 }
 0x1f9   : > { %v3278_v1 = vpop.trf.xlu1  ;;  %9635 = vmatmul.mubr.msk.f32.gmra.mxu1 %vm2321_vm0, %v3440_v51 }
 0x1fa   : > { %9614 = vmatprep.mubr.msk.f32.mxu0 %vm2321_vm0, %v3278_v1  ;;  %9675 = vmatprep.mubr.msk.f32.mxu1 %vm7723_vm1, %v7837_v38 }
 0x1fd   : > { %v3279_v31 = vpop.trf.xlu1 }
 0x1fe   : > { %9615 = vmatmul.mubr.msk.f32.gmra.mxu0 %vm2321_vm0, %v3279_v31 }
 0x201   : > { %v7707_v37 = vpop.trf.xlu1 }
 0x202   : > { %9653 = vmatprep.mubr.msk.f32.mxu0 %vm7723_vm1, %v7707_v37 }
 0x270   : > { %v9487_v19 = vpop.f32.mrf.mxu0  ;;  %v9507_v26 = vpop.f32.mrf.mxu1 }
 0x272   : > { %v2412_v53 = vpop.f32.mrf.mxu0  ;;  %v2573_v48 = vpop.f32.mrf.mxu1 }
 0x273   : > { %3610 = vxpose.xlu0.b32.start [1/8] (short) (narrow) %v2573_v48, 8  ;;  %3578 = vxpose.xlu1.b32.start [1/8] (short) (narrow) %v2412_v53, 8  ;;  %v10662_v53 = vpop.trf.xlu1  ;;  %v10664_v48 = vpop.trf.xlu0 }
 0x276   : > { %v9490_v30 = vpop.f32.mrf.mxu0  ;;  %v9510_v47 = vpop.f32.mrf.mxu1 }
 0x277   : > { %3611 = vxpose.xlu0.b32.cont [2/8] (short) (narrow) %v9507_v26, 8  ;;  %3579 = vxpose.xlu1.b32.cont [2/8] (short) (narrow) %v9487_v19, 8 }
 0x278   : > { %v2422_v62 = vpop.f32.mrf.mxu0  ;;  %v2583_v0 = vpop.f32.mrf.mxu1 }
 0x27b   : > { %3612 = vxpose.xlu0.b32.cont [3/8] (short) (narrow) %v2583_v0, 8  ;;  %3580 = vxpose.xlu1.b32.cont [3/8] (short) (narrow) %v2422_v62, 8 }
 0x27c   : > { %v9493_v54 = vpop.f32.mrf.mxu0  ;;  %v9513_v28 = vpop.f32.mrf.mxu1 }
 0x27e   : > { %v2432_v15 = vpop.f32.mrf.mxu0  ;;  %v2593_v25 = vpop.f32.mrf.mxu1 }
 0x27f   : > { %3613 = vxpose.xlu0.b32.cont [4/8] (short) (narrow) %v9510_v47, 8  ;;  %3581 = vxpose.xlu1.b32.cont [4/8] (short) (narrow) %v9490_v30, 8  ;;  %v10666_v30 = vpop.trf.xlu1  ;;  %v10668_v47 = vpop.trf.xlu0 }
 0x280   : > { %v9496_v35 = vpop.f32.mrf.mxu0  ;;  %v9516_v44 = vpop.f32.mrf.mxu1 }
 0x282   : > { %v2442_v45 = vpop.f32.mrf.mxu0  ;;  %v2603_v40 = vpop.f32.mrf.mxu1 }
 0x283   : > { %3614 = vxpose.xlu0.b32.cont [5/8] (short) (narrow) %v2593_v25, 8  ;;  %3582 = vxpose.xlu1.b32.cont [5/8] (short) (narrow) %v2432_v15, 8  ;;  %v10670_v62 = vpop.trf.xlu1  ;;  %v10672_v0 = vpop.trf.xlu0 }
 0x284   : > { %v9527_v52 = vpop.f32.mrf.mxu0  ;;  %v9547_v5 = vpop.f32.mrf.mxu1 }
 0x286   : > { %v2734_v34 = vpop.f32.mrf.mxu0  ;;  %v2895_v57 = vpop.f32.mrf.mxu1 }
 0x287   : > { %3615 = vxpose.xlu0.b32.cont [6/8] (short) (narrow) %v9513_v28, 8  ;;  %3583 = vxpose.xlu1.b32.cont [6/8] (short) (narrow) %v9493_v54, 8 }
 0x28a   : > { %v9530_v59 = vpop.f32.mrf.mxu0  ;;  %v9550_v55 = vpop.f32.mrf.mxu1 }
 0x28b   : > { %3616 = vxpose.xlu0.b32.cont [7/8] (short) (narrow) %v2603_v40, 8  ;;  %3584 = vxpose.xlu1.b32.cont [7/8] (short) (narrow) %v2442_v45, 8 }
 0x28c   : > { %v2744_v21 = vpop.f32.mrf.mxu0  ;;  %v2905_v10 = vpop.f32.mrf.mxu1 }
 0x28f   : > { %3617 = vxpose.xlu0.b32.end [8/8] (short) (narrow) %v9516_v44, 8  ;;  %3585 = vxpose.xlu1.b32.end [8/8] (short) (narrow) %v9496_v35, 8 }
 0x290   : > { %v9533_v12 = vpop.f32.mrf.mxu0  ;;  %v9553_v18 = vpop.f32.mrf.mxu1 }
 0x292   : > { %v2754_v14 = vpop.f32.mrf.mxu0  ;;  %v2915_v4 = vpop.f32.mrf.mxu1 }
 0x293   : > { %3642 = vxpose.xlu1.b32.start [1/8] (short) (narrow) %v2734_v34, 8  ;;  %3674 = vxpose.xlu0.b32.start [1/8] (short) (narrow) %v2895_v57, 8 }
 0x294   : > { %v9536_v46 = vpop.f32.mrf.mxu0  ;;  %v9556_v13 = vpop.f32.mrf.mxu1 }
 0x296   : > { %v2764_v22 = vpop.f32.mrf.mxu0  ;;  %v2925_v6 = vpop.f32.mrf.mxu1 }
 0x297   : > { %3643 = vxpose.xlu1.b32.cont [2/8] (short) (narrow) %v9527_v52, 8  ;;  %3675 = vxpose.xlu0.b32.cont [2/8] (short) (narrow) %v9547_v5, 8 }
 0x298   : > { %v9567_v2 = vpop.f32.mrf.mxu0  ;;  %v9587_v56 = vpop.f32.mrf.mxu1 }
 0x29a   : > { %v3056_v8 = vpop.f32.mrf.mxu0  ;;  %v3217_v60 = vpop.f32.mrf.mxu1 }
 0x29b   : > { %3644 = vxpose.xlu1.b32.cont [3/8] (short) (narrow) %v2744_v21, 8  ;;  %3676 = vxpose.xlu0.b32.cont [3/8] (short) (narrow) %v2905_v10, 8 }
 0x29f   : > { %3645 = vxpose.xlu1.b32.cont [4/8] (short) (narrow) %v9530_v59, 8  ;;  %3677 = vxpose.xlu0.b32.cont [4/8] (short) (narrow) %v9550_v55, 8 }
 0x2a1   : > { %v9570_v11 = vpop.f32.mrf.mxu0  ;;  %v9590_v9 = vpop.f32.mrf.mxu1 }
 0x2a3   : > { %3646 = vxpose.xlu1.b32.cont [5/8] (short) (narrow) %v2754_v14, 8  ;;  %3678 = vxpose.xlu0.b32.cont [5/8] (short) (narrow) %v2915_v4, 8  ;;  %v3066_v7 = vpop.f32.mrf.mxu0  ;;  %v3227_v42 = vpop.f32.mrf.mxu1 }
 0x2a5   : > { %v9573_v3 = vpop.f32.mrf.mxu0  ;;  %v9593_v27 = vpop.f32.mrf.mxu1 }
 0x2a7   : > { %3647 = vxpose.xlu1.b32.cont [6/8] (short) (narrow) %v9533_v12, 8  ;;  %3679 = vxpose.xlu0.b32.cont [6/8] (short) (narrow) %v9553_v18, 8  ;;  %v3076_v50 = vpop.f32.mrf.mxu0  ;;  %v3237_v61 = vpop.f32.mrf.mxu1 }
 0x2a9   : > { %v9576_v23 = vpop.f32.mrf.mxu0  ;;  %v9596_v32 = vpop.f32.mrf.mxu1 }
 0x2ab   : > { %3648 = vxpose.xlu1.b32.cont [7/8] (short) (narrow) %v2764_v22, 8  ;;  %3680 = vxpose.xlu0.b32.cont [7/8] (short) (narrow) %v2925_v6, 8  ;;  %v3086_v16 = vpop.f32.mrf.mxu0  ;;  %v3247_v39 = vpop.f32.mrf.mxu1 }
 0x2ad   : > { %v9607_v63 = vpop.f32.mrf.mxu0  ;;  %v9627_v36 = vpop.f32.mrf.mxu1 }
 0x2af   : > { %3649 = vxpose.xlu1.b32.end [8/8] (short) (narrow) %v9536_v46, 8  ;;  %3681 = vxpose.xlu0.b32.end [8/8] (short) (narrow) %v9556_v13, 8  ;;  %v3378_v17 = vpop.f32.mrf.mxu0  ;;  %v3539_v49 = vpop.f32.mrf.mxu1  ;;  %v392_v46 = vld [vmem:[%s341_s12] sm:$0xff] }
 0x2b1   : > { %v9610_v20 = vpop.f32.mrf.mxu0  ;;  %v9630_v58 = vpop.f32.mrf.mxu1 }
 0x2b3   : > { %3706 = vxpose.xlu1.b32.start [1/8] (short) (narrow) %v3056_v8, 8  ;;  %3738 = vxpose.xlu0.b32.start [1/8] (short) (narrow) %v3217_v60, 8  ;;  %v3388_v24 = vpop.f32.mrf.mxu0  ;;  %v3549_v33 = vpop.f32.mrf.mxu1 }
 0x2b5   : > { %v9633_v51 = vpop.f32.mrf.mxu1 }
 0x2b6   : > { %v9613_v29 = vpop.f32.mrf.mxu0 }
 0x2b7   : > { %3707 = vxpose.xlu1.b32.cont [2/8] (short) (narrow) %v9567_v2, 8  ;;  %3739 = vxpose.xlu0.b32.cont [2/8] (short) (narrow) %v9587_v56, 8  ;;  %v3559_v31 = vpop.f32.mrf.mxu1 }
 0x2b8   : > { %v3398_v1 = vpop.f32.mrf.mxu0 }
 0x2b9   : > { %v9636_v38 = vpop.f32.mrf.mxu1 }
 0x2bb   : > { %3708 = vxpose.xlu1.b32.cont [3/8] (short) (narrow) %v3066_v7, 8  ;;  %3740 = vxpose.xlu0.b32.cont [3/8] (short) (narrow) %v3227_v42, 8  ;;  %v3569_v26 = vpop.f32.mrf.mxu1 }
 0x2be   : > { %v9616_v37 = vpop.f32.mrf.mxu0 }
 0x2bf   : > { %3709 = vxpose.xlu1.b32.cont [4/8] (short) (narrow) %v9570_v11, 8  ;;  %3741 = vxpose.xlu0.b32.cont [4/8] (short) (narrow) %v9590_v9, 8 }
 0x2c0   : > { %v3408_v19 = vpop.f32.mrf.mxu0 }
 0x2c3   : > { %3710 = vxpose.xlu1.b32.cont [5/8] (short) (narrow) %v3076_v50, 8  ;;  %3742 = vxpose.xlu0.b32.cont [5/8] (short) (narrow) %v3237_v61, 8  ;;  %v11536_v61 = vmov 0.0  }
 0x2c7   : > { %3711 = vxpose.xlu1.b32.cont [6/8] (short) (narrow) %v9573_v3, 8  ;;  %3743 = vxpose.xlu0.b32.cont [6/8] (short) (narrow) %v9593_v27, 8 }
 0x2cb   : > { %3712 = vxpose.xlu1.b32.cont [7/8] (short) (narrow) %v3086_v16, 8  ;;  %3744 = vxpose.xlu0.b32.cont [7/8] (short) (narrow) %v3247_v39, 8 }
 0x2cf   : > { %3713 = vxpose.xlu1.b32.end [8/8] (short) (narrow) %v9576_v23, 8  ;;  %3745 = vxpose.xlu0.b32.end [8/8] (short) (narrow) %v9596_v32, 8 }
 0x2d3   : > { %3770 = vxpose.xlu1.b32.start [1/8] (short) (narrow) %v3378_v17, 8  ;;  %3802 = vxpose.xlu0.b32.start [1/8] (short) (narrow) %v3539_v49, 8 }
 0x2d7   : > { %3771 = vxpose.xlu1.b32.cont [2/8] (short) (narrow) %v9607_v63, 8  ;;  %3803 = vxpose.xlu0.b32.cont [2/8] (short) (narrow) %v9627_v36, 8 }
 0x2db   : > { %3772 = vxpose.xlu1.b32.cont [3/8] (short) (narrow) %v3388_v24, 8  ;;  %3804 = vxpose.xlu0.b32.cont [3/8] (short) (narrow) %v3549_v33, 8 }
 0x2df   : > { %3773 = vxpose.xlu1.b32.cont [4/8] (short) (narrow) %v9610_v20, 8  ;;  %3805 = vxpose.xlu0.b32.cont [4/8] (short) (narrow) %v9630_v58, 8 }
 0x2e3   : > { %3774 = vxpose.xlu1.b32.cont [5/8] (short) (narrow) %v3398_v1, 8  ;;  %3806 = vxpose.xlu0.b32.cont [5/8] (short) (narrow) %v3559_v31, 8 }
 0x2e7   : > { %3775 = vxpose.xlu1.b32.cont [6/8] (short) (narrow) %v9613_v29, 8  ;;  %3807 = vxpose.xlu0.b32.cont [6/8] (short) (narrow) %v9633_v51, 8 }
 0x2eb   : > { %3776 = vxpose.xlu1.b32.cont [7/8] (short) (narrow) %v3408_v19, 8  ;;  %3808 = vxpose.xlu0.b32.cont [7/8] (short) (narrow) %v3569_v26, 8 }
 0x2ef   : > { %3777 = vxpose.xlu1.b32.end [8/8] (short) (narrow) %v9616_v37, 8  ;;  %3809 = vxpose.xlu0.b32.end [8/8] (short) (narrow) %v9636_v38, 8  ;;  %v3594_v54 = vpop.trf.xlu1  ;;  %v3626_v28 = vpop.trf.xlu0 }
 0x30f   : > { %v3658_v15 = vpop.trf.xlu1  ;;  %v3690_v25 = vpop.trf.xlu0 }
 0x310   : > { %v3834_v45 = vcombine.low %v3594_v54, %v3658_v15  ;;  %v3842_v40 = vcombine.low %v3626_v28, %v3690_v25 }
 0x312   : > { %v3841_v52 = vrot.slane %v3834_v45, %v10073_v41  ;;  %v3849_v5 = vrot.slane %v3842_v40, %v10073_v41 }
 0x314   : > { %v3866_v21 = vcombine.low %v3841_v52, %v3849_v5 }
 0x316   : > { %v3873_v14 = vrot.slane %v3866_v21, %v10075_v43 }
 0x32f   : > { %v3722_v35 = vpop.trf.xlu1  ;;  %v3754_v44 = vpop.trf.xlu0 }
 0x34f   : > { %v3786_v34 = vpop.trf.xlu1  ;;  %v3818_v57 = vpop.trf.xlu0 }
 0x350   : > { %v3850_v59 = vcombine.low %v3722_v35, %v3786_v34  ;;  %v3858_v55 = vcombine.low %v3754_v44, %v3818_v57 }
 0x352   : > { %v3857_v10 = vrot.slane %v3850_v59, %v10073_v41  ;;  %v3865_v12 = vrot.slane %v3858_v55, %v10073_v41 }
 0x354   : > { %v3874_v18 = vcombine.low %v3857_v10, %v3865_v12 }
 0x356   : > { %v3881_v4 = vrot.slane %v3874_v18, %v10075_v43 }
 0x358   : > { %v3882_v13 = vcombine.low %v3873_v14, %v3881_v4  ;;  %v3883_v22 = vcombine.high %v3873_v14, %v3881_v4 }
 0x35a   : > { %v3884_v6 = vadd.f32 %v3882_v13, %v392_v46  ;;  %v3885_v2 = vadd.f32 %v3883_v22, %v392_v46 }
 0x35c   : > { %v9245_v56 = vmul.f32 -1.442695, %v3884_v6  ;;  %v9246_v8 = vmul.f32 -1.442695, %v3885_v2 }
 0x35e   : > { %9866 = vpow2.f32 %v9245_v56 }
 0x35f   : > { %9868 = vpow2.f32 %v9246_v8 }
 0x36b   : > { %v9867_v60 = vpop.eup %9866 }
 0x36c   : > { %v9869_v11 = vpop.eup %9868  ;;  %v3892_v9 = vadd.f32 1.0, %v9867_v60 }
 0x36d   : > { %v3893_v7 = vadd.f32 1.0, %v9869_v11 }
 0x36e   : > { %9870 = vrcp.f32 %v3892_v9 }
 0x36f   : > { %9872 = vrcp.f32 %v3893_v7 }
 0x37b   : > { %v9871_v42 = vpop.eup %9870 }
 0x37c   : > { %v9873_v3 = vpop.eup %9872  ;;  %3963 = vxpose.xlu1.b32.start.end [1/1] (short) (narrow) %v9871_v42, 64 }
 0x37d   : > { %3995 = vxpose.xlu0.b32.start.end [1/1] (short) (narrow) %v9873_v3, 64 }
 0x3f8   : > { %v3979_v27 = vpop.trf.xlu1 }
 0x3f9   : > { %v4011_v50 = vpop.trf.xlu0  ;;  %v4027_v23 = vcombine.high %v3979_v27, %v11536_v61  ;;  %v4034_v32 = vrot.slane %v3979_v27, %v10073_v41 }
 0x3fa   : > { %v4042_v16 = vcombine.high %v4011_v50, %v11536_v61  ;;  %v4049_v39 = vrot.slane %v4011_v50, %v10073_v41 }
 0x3fb   : > { %v4041_v36 = vrot.slane %v4027_v23, %v10073_v41 }
 0x3fc   : > { %v4056_v63 = vrot.slane %v4042_v16, %v10073_v41  ;;  %v4057_v17 = vcombine.low %v4034_v32, %v4049_v39  ;;  %v4058_v49 = vcombine.high %v4034_v32, %v4049_v39  ;;  %v3980_v24 = vpop.trf.xlu1 }
 0x3fd   : > { %v4012_v58 = vpop.trf.xlu0  ;;  %v4100_v31 = vrot.slane %v3980_v24, %v10073_v41  ;;  %v4093_v28 = vcombine.high %v3980_v24, %v11536_v61 }
 0x3fe   : > { %v4065_v20 = vrot.slane %v4057_v17, %v10075_v43  ;;  %v4073_v33 = vcombine.low %v4041_v36, %v4056_v63  ;;  %v4072_v51 = vrot.slane %v4058_v49, %v10075_v43  ;;  %v4115_v1 = vrot.slane %v4012_v58, %v10073_v41 }
 0x3ff   : > { %v4074_v37 = vcombine.high %v4041_v36, %v4056_v63  ;;  %v4108_v54 = vcombine.high %v4012_v58, %v11536_v61  ;;  %v4107_v45 = vrot.slane %v4093_v28, %v10073_v41 }
 0x400   : > { %4555 = vxpose.xlu1.b32.start.end [1/1] (short) (narrow) %v4065_v20, 8  ;;  %v4089_v29 = vcombine.high %v4065_v20, %v11536_v61  ;;  %v4090_v38 = vcombine.high %v4072_v51, %v11536_v61  ;;  %v4081_v19 = vrot.slane %v4073_v33, %v10075_v43  ;;  %v4123_v26 = vcombine.low %v4100_v31, %v4115_v1  ;;  %v3981_v57 = vpop.trf.xlu1 }
 0x401   : > { %v4088_v25 = vrot.slane %v4074_v37, %v10075_v43  ;;  %v4122_v44 = vrot.slane %v4108_v54, %v10073_v41  ;;  %v4124_v40 = vcombine.high %v4100_v31, %v4115_v1  ;;  %v4013_v34 = vpop.trf.xlu0  ;;  %v4166_v10 = vrot.slane %v3981_v57, %v10073_v41 }
 0x402   : > { %4587 = vxpose.xlu0.b32.start.end [1/1] (short) (narrow) %v4089_v29, 8  ;;  %v4091_v15 = vcombine.high %v4081_v19, %v11536_v61  ;;  %v4131_v35 = vrot.slane %v4123_v26, %v10075_v43  ;;  %v4181_v21 = vrot.slane %v4013_v34, %v10073_v41  ;;  %v4174_v46 = vcombine.high %v4013_v34, %v11536_v61 }
 0x403   : > { %v4092_v52 = vcombine.high %v4088_v25, %v11536_v61  ;;  %v4139_v59 = vcombine.low %v4107_v45, %v4122_v44  ;;  %v4138_v55 = vrot.slane %v4124_v40, %v10075_v43  ;;  %v4140_v12 = vcombine.high %v4107_v45, %v4122_v44 }
 0x404   : > { %4619 = vxpose.xlu1.b32.start.end [1/1] (short) (narrow) %v4072_v51, 8  ;;  %v4155_v5 = vcombine.high %v4131_v35, %v11536_v61  ;;  %v4189_v4 = vcombine.low %v4166_v10, %v4181_v21  ;;  %v4159_v13 = vcombine.high %v3981_v57, %v11536_v61  ;;  %v4188_v56 = vrot.slane %v4174_v46, %v10073_v41  ;;  %v3982_v42 = vpop.trf.xlu1 }
 0x405   : > { %v4156_v18 = vcombine.high %v4138_v55, %v11536_v61  ;;  %v4147_v14 = vrot.slane %v4139_v59, %v10075_v43  ;;  %v4154_v6 = vrot.slane %v4140_v12, %v10075_v43  ;;  %v4190_v60 = vcombine.high %v4166_v10, %v4181_v21  ;;  %v4014_v7 = vpop.trf.xlu0 }
 0x406   : > { %4651 = vxpose.xlu0.b32.start.end [1/1] (short) (narrow) %v4090_v38, 8  ;;  %v4197_v2 = vrot.slane %v4189_v4, %v10075_v43  ;;  %v4173_v8 = vrot.slane %v4159_v13, %v10073_v41  ;;  %v4247_v50 = vrot.slane %v4014_v7, %v10073_v41  ;;  %v4232_v23 = vrot.slane %v3982_v42, %v10073_v41 }
 0x407   : > { %v4157_v22 = vcombine.high %v4147_v14, %v11536_v61  ;;  %v4158_v11 = vcombine.high %v4154_v6, %v11536_v61  ;;  %v4204_v3 = vrot.slane %v4190_v60, %v10075_v43  ;;  %v4240_v36 = vcombine.high %v4014_v7, %v11536_v61 }
 0x408   : > { %4683 = vxpose.xlu1.b32.start.end [1/1] (short) (narrow) %v4081_v19, 8  ;;  %v4221_v9 = vcombine.high %v4197_v2, %v11536_v61  ;;  %v4205_v27 = vcombine.low %v4173_v8, %v4188_v56  ;;  %v4206_v39 = vcombine.high %v4173_v8, %v4188_v56  ;;  %v4255_v63 = vcombine.low %v4232_v23, %v4247_v50  ;;  %v3983_v37 = vpop.trf.xlu1 }
 0x409   : > { %v4222_v32 = vcombine.high %v4204_v3, %v11536_v61  ;;  %v4225_v17 = vcombine.high %v3982_v42, %v11536_v61  ;;  %v4254_v24 = vrot.slane %v4240_v36, %v10073_v41  ;;  %v4256_v29 = vcombine.high %v4232_v23, %v4247_v50  ;;  %v4015_v31 = vpop.trf.xlu0 }
 0x40a   : > { %4715 = vxpose.xlu0.b32.start.end [1/1] (short) (narrow) %v4091_v15, 8  ;;  %v4213_v16 = vrot.slane %v4205_v27, %v10075_v43  ;;  %v4220_v20 = vrot.slane %v4206_v39, %v10075_v43  ;;  %v4263_v58 = vrot.slane %v4255_v63, %v10075_v43  ;;  %v4313_v26 = vrot.slane %v4015_v31, %v10073_v41 }
 0x40b   : > { %v4239_v33 = vrot.slane %v4225_v17, %v10073_v41  ;;  %v4270_v38 = vrot.slane %v4256_v29, %v10075_v43  ;;  %v4298_v54 = vrot.slane %v3983_v37, %v10073_v41  ;;  %v4306_v44 = vcombine.high %v4015_v31, %v11536_v61 }
 0x40c   : > { %4747 = vxpose.xlu1.b32.start.end [1/1] (short) (narrow) %v4088_v25, 8  ;;  %v4223_v49 = vcombine.high %v4213_v16, %v11536_v61  ;;  %v4224_v51 = vcombine.high %v4220_v20, %v11536_v61  ;;  %v4287_v1 = vcombine.high %v4263_v58, %v11536_v61  ;;  %v4291_v45 = vcombine.high %v3983_v37, %v11536_v61  ;;  %v3984_v12 = vpop.trf.xlu1 }
 0x40d   : > { %v4271_v19 = vcombine.low %v4239_v33, %v4254_v24  ;;  %v4288_v28 = vcombine.high %v4270_v38, %v11536_v61  ;;  %v4272_v25 = vcombine.high %v4239_v33, %v4254_v24  ;;  %v4320_v34 = vrot.slane %v4306_v44, %v10073_v41  ;;  %v4016_v10 = vpop.trf.xlu0 }
 0x40e   : > { %4779 = vxpose.xlu0.b32.start.end [1/1] (short) (narrow) %v4092_v52, 8  ;;  %v4305_v57 = vrot.slane %v4291_v45, %v10073_v41  ;;  %v4322_v59 = vcombine.high %v4298_v54, %v4313_v26  ;;  %v4379_v4 = vrot.slane %v4016_v10, %v10073_v41  ;;  %v4364_v46 = vrot.slane %v3984_v12, %v10073_v41 }
 0x40f   : > { %v4279_v15 = vrot.slane %v4271_v19, %v10075_v43  ;;  %v4286_v52 = vrot.slane %v4272_v25, %v10075_v43  ;;  %v4372_v56 = vcombine.high %v4016_v10, %v11536_v61  ;;  %v4357_v8 = vcombine.high %v3984_v12, %v11536_v61 }
 0x410   : > { %4811 = vxpose.xlu1.b32.start.end [1/1] (short) (narrow) %v4131_v35, 8  ;;  %v4321_v35 = vcombine.low %v4298_v54, %v4313_v26 }
 0x411   : > { %v4289_v40 = vcombine.high %v4279_v15, %v11536_v61  ;;  %v4386_v7 = vrot.slane %v4372_v56, %v10073_v41  ;;  %v4371_v42 = vrot.slane %v4357_v8, %v10073_v41  ;;  %v4017_v23 = vpop.trf.xlu0 }
 0x412   : > { %4843 = vxpose.xlu0.b32.start.end [1/1] (short) (narrow) %v4155_v5, 8  ;;  %v4329_v5 = vrot.slane %v4321_v35, %v10075_v43  ;;  %v4445_v63 = vrot.slane %v4017_v23, %v10073_v41  ;;  %v4438_v24 = vcombine.high %v4017_v23, %v11536_v61  ;;  %v3915_v23 = vld [vmem:[%s10255_s7 + $0x88] sm:$0xff] }
 0x413   : > { %v4403_v39 = vcombine.low %v4371_v42, %v4386_v7 }
 0x414   : > { %4875 = vxpose.xlu1.b32.start.end [1/1] (short) (narrow) %v4138_v55, 8  ;;  %v4290_v55 = vcombine.high %v4286_v52, %v11536_v61  ;;  %v4353_v21 = vcombine.high %v4329_v5, %v11536_v61  ;;  %v4452_v31 = vrot.slane %v4438_v24, %v10073_v41 }
 0x415   : > { %v4018_v54 = vpop.trf.xlu0 }
 0x416   : > { %4907 = vxpose.xlu0.b32.start.end [1/1] (short) (narrow) %v4156_v18, 8  ;;  %v4336_v18 = vrot.slane %v4322_v59, %v10075_v43  ;;  %v4511_v35 = vrot.slane %v4018_v54, %v10073_v41 }
 0x418   : > { %4939 = vxpose.xlu1.b32.start.end [1/1] (short) (narrow) %v4147_v14, 8  ;;  %v4337_v14 = vcombine.low %v4305_v57, %v4320_v34  ;;  %v4354_v13 = vcombine.high %v4336_v18, %v11536_v61 }
 0x41a   : > { %4971 = vxpose.xlu0.b32.start.end [1/1] (short) (narrow) %v4157_v22, 8  ;;  %v4345_v22 = vrot.slane %v4337_v14, %v10075_v43 }
 0x41c   : > { %5003 = vxpose.xlu1.b32.start.end [1/1] (short) (narrow) %v4154_v6, 8  ;;  %v4338_v6 = vcombine.high %v4305_v57, %v4320_v34  ;;  %v4355_v60 = vcombine.high %v4345_v22, %v11536_v61  ;;  %v4504_v34 = vcombine.high %v4018_v54, %v11536_v61 }
 0x41e   : > { %5035 = vxpose.xlu0.b32.start.end [1/1] (short) (narrow) %v4158_v11, 8  ;;  %v4352_v11 = vrot.slane %v4338_v6, %v10075_v43  ;;  %v4518_v10 = vrot.slane %v4504_v34, %v10073_v41 }
 0x420   : > { %5067 = vxpose.xlu1.b32.start.end [1/1] (short) (narrow) %v4197_v2, 8  ;;  %v4387_v2 = vcombine.low %v4364_v46, %v4379_v4  ;;  %v4356_v27 = vcombine.high %v4352_v11, %v11536_v61 }
 0x422   : > { %5099 = vxpose.xlu0.b32.start.end [1/1] (short) (narrow) %v4221_v9, 8  ;;  %v4395_v9 = vrot.slane %v4387_v2, %v10075_v43 }
 0x424   : > { %5131 = vxpose.xlu1.b32.start.end [1/1] (short) (narrow) %v4204_v3, 8  ;;  %v4388_v3 = vcombine.high %v4364_v46, %v4379_v4  ;;  %v4419_v50 = vcombine.high %v4395_v9, %v11536_v61 }
 0x426   : > { %5163 = vxpose.xlu0.b32.start.end [1/1] (short) (narrow) %v4222_v32, 8  ;;  %v3985_v32 = vpop.trf.xlu1 }
 0x427   : > { %v4430_v36 = vrot.slane %v3985_v32, %v10073_v41  ;;  %v4423_v33 = vcombine.high %v3985_v32, %v11536_v61 }
 0x428   : > { %5195 = vxpose.xlu1.b32.start.end [1/1] (short) (narrow) %v4213_v16, 8  ;;  %v4402_v16 = vrot.slane %v4388_v3, %v10075_v43 }
 0x429   : > { %v4437_v37 = vrot.slane %v4423_v33, %v10073_v41 }
 0x42a   : > { %5227 = vxpose.xlu0.b32.start.end [1/1] (short) (narrow) %v4223_v49, 8  ;;  %v4420_v17 = vcombine.high %v4402_v16, %v11536_v61  ;;  %v4411_v49 = vrot.slane %v4403_v39, %v10075_v43 }
 0x42b   : > { %v4469_v25 = vcombine.low %v4437_v37, %v4452_v31 }
 0x42c   : > { %5259 = vxpose.xlu1.b32.start.end [1/1] (short) (narrow) %v4220_v20, 8  ;;  %v4404_v20 = vcombine.high %v4371_v42, %v4386_v7  ;;  %v4421_v29 = vcombine.high %v4411_v49, %v11536_v61  ;;  %v3922_v42 = vld [vmem:[%s10255_s7 + $0xc0] sm:$0xff] }
 0x42e   : > { %5291 = vxpose.xlu0.b32.start.end [1/1] (short) (narrow) %v4224_v51, 8  ;;  %v4418_v51 = vrot.slane %v4404_v20, %v10075_v43 }
 0x430   : > { %5323 = vxpose.xlu1.b32.start.end [1/1] (short) (narrow) %v4263_v58, 8  ;;  %v4453_v58 = vcombine.low %v4430_v36, %v4445_v63  ;;  %v4422_v19 = vcombine.high %v4418_v51, %v11536_v61 }
 0x432   : > { %5355 = vxpose.xlu0.b32.start.end [1/1] (short) (narrow) %v4287_v1, 8  ;;  %v4461_v1 = vrot.slane %v4453_v58, %v10075_v43  ;;  %v3916_v58 = vld [vmem:[%s10255_s7 + $0x90] sm:$0xff] }
 0x434   : > { %5387 = vxpose.xlu1.b32.start.end [1/1] (short) (narrow) %v4270_v38, 8  ;;  %v4454_v38 = vcombine.high %v4430_v36, %v4445_v63  ;;  %v4485_v26 = vcombine.high %v4461_v1, %v11536_v61  ;;  %v3923_v63 = vld [vmem:[%s10255_s7 + $0xc8] sm:$0xff] }
 0x436   : > { %5419 = vxpose.xlu0.b32.start.end [1/1] (short) (narrow) %v4288_v28, 8  ;;  %v3986_v28 = vpop.trf.xlu1 }
 0x437   : > { %v4496_v44 = vrot.slane %v3986_v28, %v10073_v41  ;;  %v4489_v57 = vcombine.high %v3986_v28, %v11536_v61 }
 0x438   : > { %5451 = vxpose.xlu1.b32.start.end [1/1] (short) (narrow) %v4279_v15, 8  ;;  %v4468_v15 = vrot.slane %v4454_v38, %v10075_v43 }
 0x439   : > { %v4503_v12 = vrot.slane %v4489_v57, %v10073_v41 }
 0x43a   : > { %5483 = vxpose.xlu0.b32.start.end [1/1] (short) (narrow) %v4289_v40, 8  ;;  %v4486_v45 = vcombine.high %v4468_v15, %v11536_v61  ;;  %v4477_v40 = vrot.slane %v4469_v25, %v10075_v43  ;;  %v3925_v25 = vld [vmem:[%s10255_s7 + $0xd8] sm:$0xff] }
 0x43b   : > { %v4535_v46 = vcombine.low %v4503_v12, %v4518_v10 }
 0x43c   : > { %5515 = vxpose.xlu1.b32.start.end [1/1] (short) (narrow) %v4286_v52, 8  ;;  %v4470_v52 = vcombine.high %v4437_v37, %v4452_v31  ;;  %v4487_v59 = vcombine.high %v4477_v40, %v11536_v61  ;;  %v3924_v31 = vld [vmem:[%s10255_s7 + $0xd0] sm:$0xff] }
 0x43d   : > { %v4543_v2 = vrot.slane %v4535_v46, %v10075_v43 }
 0x43e   : > { %5547 = vxpose.xlu0.b32.start.end [1/1] (short) (narrow) %v4290_v55, 8  ;;  %v4484_v55 = vrot.slane %v4470_v52, %v10075_v43 }
 0x43f   : > { %v4553_v56 = vcombine.high %v4543_v2, %v11536_v61 }
 0x440   : > { %5579 = vxpose.xlu1.b32.start.end [1/1] (short) (narrow) %v4329_v5, 8  ;;  %v4519_v5 = vcombine.low %v4496_v44, %v4511_v35  ;;  %v4488_v14 = vcombine.high %v4484_v55, %v11536_v61 }
 0x442   : > { %5611 = vxpose.xlu0.b32.start.end [1/1] (short) (narrow) %v4353_v21, 8  ;;  %v4527_v21 = vrot.slane %v4519_v5, %v10075_v43  ;;  %v3918_v5 = vld [vmem:[%s10255_s7 + $0xa0] sm:$0xff] }
 0x444   : > { %5643 = vxpose.xlu1.b32.start.end [1/1] (short) (narrow) %v4336_v18, 8  ;;  %v4520_v18 = vcombine.high %v4496_v44, %v4511_v35  ;;  %v4551_v4 = vcombine.high %v4527_v21, %v11536_v61 }
 0x446   : > { %5675 = vxpose.xlu0.b32.start.end [1/1] (short) (narrow) %v4354_v13, 8  ;;  %v4534_v13 = vrot.slane %v4520_v18, %v10075_v43 }
 0x448   : > { %5707 = vxpose.xlu1.b32.start.end [1/1] (short) (narrow) %v4345_v22, 8  ;;  %v4536_v22 = vcombine.high %v4503_v12, %v4518_v10  ;;  %v4552_v6 = vcombine.high %v4534_v13, %v11536_v61  ;;  %v3926_v10 = vld [vmem:[%s10255_s7 + $0xe0] sm:$0xff] }
 0x44a   : > { %5739 = vxpose.xlu0.b32.start.end [1/1] (short) (narrow) %v4355_v60, 8  ;;  %v4550_v8 = vrot.slane %v4536_v22, %v10075_v43 }
 0x44c   : > { %5771 = vxpose.xlu1.b32.start.end [1/1] (short) (narrow) %v4352_v11, 8  ;;  %v4554_v11 = vcombine.high %v4550_v8, %v11536_v61 }
 0x44e   : > { %5803 = vxpose.xlu0.b32.start.end [1/1] (short) (narrow) %v4356_v27, 8 }
 0x450   : > { %5835 = vxpose.xlu1.b32.start.end [1/1] (short) (narrow) %v4395_v9, 8  ;;  %v3914_v9 = vld [vmem:[%s10255_s7 + $0x80] sm:$0xff] }
 0x452   : > { %5867 = vxpose.xlu0.b32.start.end [1/1] (short) (narrow) %v4419_v50, 8 }
 0x454   : > { %5899 = vxpose.xlu1.b32.start.end [1/1] (short) (narrow) %v4402_v16, 8 }
 0x456   : > { %5931 = vxpose.xlu0.b32.start.end [1/1] (short) (narrow) %v4420_v17, 8 }
 0x458   : > { %5963 = vxpose.xlu1.b32.start.end [1/1] (short) (narrow) %v4411_v49, 8 }
 0x45a   : > { %5995 = vxpose.xlu0.b32.start.end [1/1] (short) (narrow) %v4421_v29, 8 }
 0x45c   : > { %6027 = vxpose.xlu1.b32.start.end [1/1] (short) (narrow) %v4418_v51, 8 }
 0x45e   : > { %6059 = vxpose.xlu0.b32.start.end [1/1] (short) (narrow) %v4422_v19, 8 }
 0x460   : > { %6091 = vxpose.xlu1.b32.start.end [1/1] (short) (narrow) %v4461_v1, 8 }
 0x462   : > { %6123 = vxpose.xlu0.b32.start.end [1/1] (short) (narrow) %v4485_v26, 8  ;;  %v3917_v26 = vld [vmem:[%s10255_s7 + $0x98] sm:$0xff] }
 0x464   : > { %6155 = vxpose.xlu1.b32.start.end [1/1] (short) (narrow) %v4468_v15, 8 }
 0x466   : > { %6187 = vxpose.xlu0.b32.start.end [1/1] (short) (narrow) %v4486_v45, 8 }
 0x468   : > { %6219 = vxpose.xlu1.b32.start.end [1/1] (short) (narrow) %v4477_v40, 8 }
 0x46a   : > { %6251 = vxpose.xlu0.b32.start.end [1/1] (short) (narrow) %v4487_v59, 8 }
 0x46c   : > { %6283 = vxpose.xlu1.b32.start.end [1/1] (short) (narrow) %v4484_v55, 8 }
 0x46e   : > { %6315 = vxpose.xlu0.b32.start.end [1/1] (short) (narrow) %v4488_v14, 8 }
 0x470   : > { %6347 = vxpose.xlu1.b32.start.end [1/1] (short) (narrow) %v4527_v21, 8 }
 0x472   : > { %6379 = vxpose.xlu0.b32.start.end [1/1] (short) (narrow) %v4551_v4, 8 }
 0x474   : > { %6411 = vxpose.xlu1.b32.start.end [1/1] (short) (narrow) %v4534_v13, 8  ;;  %v3919_v13 = vld [vmem:[%s10255_s7 + $0xa8] sm:$0xff] }
 0x476   : > { %6443 = vxpose.xlu0.b32.start.end [1/1] (short) (narrow) %v4552_v6, 8 }
 0x478   : > { %6475 = vxpose.xlu1.b32.start.end [1/1] (short) (narrow) %v4543_v2, 8 }
 0x47a   : > { %6507 = vxpose.xlu0.b32.start.end [1/1] (short) (narrow) %v4553_v56, 8 }
 0x47c   : > { %6539 = vxpose.xlu1.b32.start.end [1/1] (short) (narrow) %v4550_v8, 8  ;;  %v4571_v60 = vpop.trf.xlu1 }
 0x47e   : > { %v4603_v7 = vpop.trf.xlu0  ;;  %6571 = vxpose.xlu0.b32.start.end [1/1] (short) (narrow) %v4554_v11, 8 }
 0x480   : > { %v4635_v3 = vpop.trf.xlu1  ;;  %7950 = vxpose.xlu1.b32.start [1/8] (short) (narrow) %v3914_v9, 32 }
 0x481   : > { %v6603_v27 = vcombine.low %v4571_v60, %v4635_v3  ;;  %v6604_v50 = vcombine.high %v4571_v60, %v4635_v3 }
 0x482   : > { %v4667_v32 = vpop.trf.xlu0  ;;  %8079 = vxpose.xlu0.b32.start [1/8] (short) (narrow) %v3922_v42, 32 }
 0x483   : > { %v6619_v16 = vcombine.low %v4603_v7, %v4667_v32  ;;  %v6620_v39 = vcombine.high %v4603_v7, %v4667_v32  ;;  %v6611_v61 = vrot.slane %v6603_v27, %v10073_v41  ;;  %v6618_v17 = vrot.slane %v6604_v50, %v10073_v41  ;;  %v3927_v27 = vld [vmem:[%s10255_s7 + $0xe8] sm:$0xff] }
 0x484   : > { %v4699_v36 = vpop.trf.xlu1  ;;  %7951 = vxpose.xlu1.b32.cont [2/8] (short) (narrow) %v3915_v23, 32 }
 0x485   : > { %v6627_v49 = vrot.slane %v6619_v16, %v10073_v41  ;;  %v6634_v20 = vrot.slane %v6620_v39, %v10073_v41 }
 0x486   : > { %v4731_v24 = vpop.trf.xlu0  ;;  %8080 = vxpose.xlu0.b32.cont [2/8] (short) (narrow) %v3923_v63, 32 }
 0x487   : > { %v6667_v33 = vcombine.low %v6611_v61, %v6627_v49  ;;  %v6668_v29 = vcombine.high %v6611_v61, %v6627_v49  ;;  %v6683_v51 = vcombine.low %v6618_v17, %v6634_v20  ;;  %v6684_v1 = vcombine.high %v6618_v17, %v6634_v20  ;;  %v3920_v61 = vld [vmem:[%s10255_s7 + $0xb0] sm:$0xff] }
 0x488   : > { %v4763_v37 = vpop.trf.xlu1  ;;  %7952 = vxpose.xlu1.b32.cont [3/8] (short) (narrow) %v3916_v58, 32 }
 0x489   : > { %v6635_v38 = vcombine.low %v4699_v36, %v4763_v37  ;;  %v6636_v19 = vcombine.high %v4699_v36, %v4763_v37  ;;  %v6675_v18 = vrot.slane %v6667_v33, %v10075_v43  ;;  %v6682_v14 = vrot.slane %v6668_v29, %v10075_v43 }
 0x48a   : > { %v4795_v54 = vpop.trf.xlu0  ;;  %8081 = vxpose.xlu0.b32.cont [3/8] (short) (narrow) %v3924_v31, 32  ;;  %v6691_v56 = vrot.slane %v6683_v51, %v10075_v43  ;;  %v6698_v60 = vrot.slane %v6684_v1, %v10075_v43  ;;  %v3928_v31 = vld [vmem:[%s10255_s7 + $0xf0] sm:$0xff] }
 0x48b   : > { %v6651_v28 = vcombine.low %v4731_v24, %v4795_v54  ;;  %v6652_v15 = vcombine.high %v4731_v24, %v4795_v54  ;;  %v6643_v44 = vrot.slane %v6635_v38, %v10073_v41  ;;  %v6650_v45 = vrot.slane %v6636_v19, %v10073_v41 }
 0x48c   : > { %v4827_v35 = vpop.trf.xlu1  ;;  %7953 = vxpose.xlu1.b32.cont [4/8] (short) (narrow) %v3917_v26, 32  ;;  %v3921_v26 = vld [vmem:[%s10255_s7 + $0xb8] sm:$0xff] }
 0x48d   : > { %v6659_v40 = vrot.slane %v6651_v28, %v10073_v41  ;;  %v6666_v52 = vrot.slane %v6652_v15, %v10073_v41 }
 0x48e   : > { %v4859_v34 = vpop.trf.xlu0  ;;  %8082 = vxpose.xlu0.b32.cont [4/8] (short) (narrow) %v3925_v25, 32  ;;  %v3929_v25 = vld [vmem:[%s10255_s7 + $0xf8] sm:$0xff] }
 0x48f   : > { %v6699_v57 = vcombine.low %v6643_v44, %v6659_v40  ;;  %v6700_v59 = vcombine.high %v6643_v44, %v6659_v40  ;;  %v6715_v55 = vcombine.low %v6650_v45, %v6666_v52  ;;  %v6716_v21 = vcombine.high %v6650_v45, %v6666_v52 }
 0x490   : > { %v4891_v12 = vpop.trf.xlu1  ;;  %7954 = vxpose.xlu1.b32.cont [5/8] (short) (narrow) %v3918_v5, 32  ;;  %v3930_v5 = vld [vmem:[%s10255_s7 + $0x100] sm:$0xff] }
 0x491   : > { %v6739_v4 = vcombine.low %v4827_v35, %v4891_v12  ;;  %v6740_v46 = vcombine.high %v4827_v35, %v4891_v12  ;;  %v6707_v22 = vrot.slane %v6699_v57, %v10075_v43  ;;  %v6714_v6 = vrot.slane %v6700_v59, %v10075_v43 }
 0x492   : > { %v4923_v2 = vpop.trf.xlu0  ;;  %8083 = vxpose.xlu0.b32.cont [5/8] (short) (narrow) %v3926_v10, 32  ;;  %v6723_v8 = vrot.slane %v6715_v55, %v10075_v43  ;;  %v6730_v11 = vrot.slane %v6716_v21, %v10075_v43  ;;  %v3938_v10 = vld [vmem:[%s10255_s7 + $0x140] sm:$0xff] }
 0x493   : > { %v6747_v9 = vrot.slane %v6739_v4, %v10073_v41  ;;  %v6754_v7 = vrot.slane %v6740_v46, %v10073_v41  ;;  %v6755_v42 = vcombine.low %v4859_v34, %v4923_v2  ;;  %v6756_v3 = vcombine.high %v4859_v34, %v4923_v2 }
 0x494   : > { %v4955_v50 = vpop.trf.xlu1  ;;  %7955 = vxpose.xlu1.b32.cont [6/8] (short) (narrow) %v3919_v13, 32  ;;  %v10832_v23 = vcombine.low %v6675_v18, %v6707_v22  ;;  %v10834_v32 = vcombine.high %v6675_v18, %v6707_v22  ;;  %v10836_v16 = vcombine.low %v6682_v14, %v6714_v6  ;;  %v10838_v39 = vcombine.high %v6682_v14, %v6714_v6  ;;  %v3931_v13 = vld [vmem:[%s10255_s7 + $0x108] sm:$0xff] }
 0x495   : > { %v6763_v63 = vrot.slane %v6755_v42, %v10073_v41  ;;  %v6770_v36 = vrot.slane %v6756_v3, %v10073_v41  ;;  %v10843_v17 = vcombine.low %v6691_v56, %v6723_v8  ;;  %v10845_v49 = vcombine.high %v6691_v56, %v6723_v8 }
 0x496   : > { %11537 = vst [vmem:[#allocation6_spill] sm:$0xff] %v10836_v16  ;;  %11538 = vst [vmem:[#allocation8_spill] sm:$0xff] %v10838_v39  ;;  %v4987_v20 = vpop.trf.xlu0  ;;  %8084 = vxpose.xlu0.b32.cont [6/8] (short) (narrow) %v3927_v27, 32  ;;  %v10847_v58 = vcombine.low %v6698_v60, %v6730_v11  ;;  %v10849_v24 = vcombine.high %v6698_v60, %v6730_v11  ;;  %v3939_v27 = vld [vmem:[%s10255_s7 + $0x148] sm:$0xff] }
 0x497   : > { %11539 = vst [vmem:[#allocation7_spill] sm:$0xff] %v10843_v17  ;;  %11540 = vst [vmem:[#allocation23_spill] sm:$0xff] %v10845_v49  ;;  %v6803_v33 = vcombine.low %v6747_v9, %v6763_v63  ;;  %v6804_v29 = vcombine.high %v6747_v9, %v6763_v63  ;;  %v6819_v51 = vcombine.low %v6754_v7, %v6770_v36 }
 0x498   : > { %11541 = vst [vmem:[#allocation17_spill] sm:$0xff] %v10847_v58  ;;  %11542 = vst [vmem:[#allocation25_spill] sm:$0xff] %v10849_v24  ;;  %v6820_v1 = vcombine.high %v6754_v7, %v6770_v36  ;;  %v5019_v37 = vpop.trf.xlu1  ;;  %7956 = vxpose.xlu1.b32.cont [7/8] (short) (narrow) %v3920_v61, 32 }
 0x499   : > { %v6771_v38 = vcombine.low %v4955_v50, %v5019_v37  ;;  %v6772_v19 = vcombine.high %v4955_v50, %v5019_v37  ;;  %v6811_v18 = vrot.slane %v6803_v33, %v10075_v43  ;;  %v6818_v14 = vrot.slane %v6804_v29, %v10075_v43 }
 0x49a   : > { %v5051_v54 = vpop.trf.xlu0  ;;  %8085 = vxpose.xlu0.b32.cont [7/8] (short) (narrow) %v3928_v31, 32  ;;  %v6827_v56 = vrot.slane %v6819_v51, %v10075_v43  ;;  %v6834_v60 = vrot.slane %v6820_v1, %v10075_v43  ;;  %v3932_v51 = vld [vmem:[%s10255_s7 + $0x110] sm:$0xff] }
 0x49b   : > { %v6787_v28 = vcombine.low %v4987_v20, %v5051_v54  ;;  %v6788_v15 = vcombine.high %v4987_v20, %v5051_v54  ;;  %v6779_v44 = vrot.slane %v6771_v38, %v10073_v41  ;;  %v6786_v45 = vrot.slane %v6772_v19, %v10073_v41 }
 0x49c   : > { %v5083_v35 = vpop.trf.xlu1  ;;  %7957 = vxpose.xlu1.b32.end [8/8] (short) (narrow) %v3921_v26, 32 }
 0x49d   : > { %v6795_v40 = vrot.slane %v6787_v28, %v10073_v41  ;;  %v6802_v52 = vrot.slane %v6788_v15, %v10073_v41 }
 0x49e   : > { %v5115_v34 = vpop.trf.xlu0  ;;  %8086 = vxpose.xlu0.b32.end [8/8] (short) (narrow) %v3929_v25, 32  ;;  %v3940_v25 = vld [vmem:[%s10255_s7 + $0x150] sm:$0xff] }
 0x49f   : > { %v6835_v57 = vcombine.low %v6779_v44, %v6795_v40  ;;  %v6836_v59 = vcombine.high %v6779_v44, %v6795_v40  ;;  %v6851_v55 = vcombine.low %v6786_v45, %v6802_v52  ;;  %v6852_v21 = vcombine.high %v6786_v45, %v6802_v52  ;;  %v3933_v40 = vld [vmem:[%s10255_s7 + $0x118] sm:$0xff] }
 0x4a0   : > { %v5147_v12 = vpop.trf.xlu1  ;;  %8208 = vxpose.xlu1.b32.start [1/8] (short) (narrow) %v3930_v5, 32 }
 0x4a1   : > { %v6875_v4 = vcombine.low %v5083_v35, %v5147_v12  ;;  %v6876_v46 = vcombine.high %v5083_v35, %v5147_v12  ;;  %v6843_v22 = vrot.slane %v6835_v57, %v10075_v43  ;;  %v6850_v6 = vrot.slane %v6836_v59, %v10075_v43  ;;  %v3941_v57 = vld [vmem:[%s10255_s7 + $0x158] sm:$0xff] }
 0x4a2   : > { %v5179_v2 = vpop.trf.xlu0  ;;  %8337 = vxpose.xlu0.b32.start [1/8] (short) (narrow) %v3938_v10, 32  ;;  %v6859_v8 = vrot.slane %v6851_v55, %v10075_v43  ;;  %v6866_v11 = vrot.slane %v6852_v21, %v10075_v43 }
 0x4a3   : > { %v6883_v9 = vrot.slane %v6875_v4, %v10073_v41  ;;  %v6890_v7 = vrot.slane %v6876_v46, %v10073_v41  ;;  %v6891_v42 = vcombine.low %v5115_v34, %v5179_v2  ;;  %v6892_v3 = vcombine.high %v5115_v34, %v5179_v2 }
 0x4a4   : > { %v5211_v50 = vpop.trf.xlu1  ;;  %8209 = vxpose.xlu1.b32.cont [2/8] (short) (narrow) %v3931_v13, 32  ;;  %v10872_v63 = vcombine.low %v6811_v18, %v6843_v22  ;;  %v10874_v36 = vcombine.high %v6811_v18, %v6843_v22  ;;  %v10876_v61 = vcombine.low %v6818_v14, %v6850_v6  ;;  %v10878_v20 = vcombine.high %v6818_v14, %v6850_v6  ;;  %v3934_v18 = vld [vmem:[%s10255_s7 + $0x120] sm:$0xff] }
 0x4a5   : > { %v6899_v33 = vrot.slane %v6891_v42, %v10073_v41  ;;  %v6906_v29 = vrot.slane %v6892_v3, %v10073_v41  ;;  %v10883_v1 = vcombine.low %v6827_v56, %v6859_v8  ;;  %v10885_v31 = vcombine.high %v6827_v56, %v6859_v8  ;;  %v3942_v6 = vld [vmem:[%s10255_s7 + $0x160] sm:$0xff] }
 0x4a6   : > { %11543 = vst [vmem:[#allocation18_spill] sm:$0xff] %v10876_v61  ;;  %11544 = vst [vmem:[#allocation19_spill] sm:$0xff] %v10878_v20  ;;  %v5243_v37 = vpop.trf.xlu0  ;;  %8338 = vxpose.xlu0.b32.cont [2/8] (short) (narrow) %v3939_v27, 32  ;;  %v10887_v38 = vcombine.low %v6834_v60, %v6866_v11  ;;  %v10889_v19 = vcombine.high %v6834_v60, %v6866_v11 }
 0x4a7   : > { %11545 = vst [vmem:[#allocation13_spill] sm:$0xff] %v10883_v1  ;;  %11546 = vst [vmem:[#allocation14_spill] sm:$0xff] %v10885_v31  ;;  %v6939_v26 = vcombine.low %v6883_v9, %v6899_v33  ;;  %v6940_v54 = vcombine.high %v6883_v9, %v6899_v33  ;;  %v6955_v28 = vcombine.low %v6890_v7, %v6906_v29  ;;  %v3935_v9 = vld [vmem:[%s10255_s7 + $0x128] sm:$0xff] }
 0x4a8   : > { %11547 = vst [vmem:[#allocation20_spill] sm:$0xff] %v10887_v38  ;;  %11548 = vst [vmem:[#allocation9_spill] sm:$0xff] %v10889_v19  ;;  %v6956_v15 = vcombine.high %v6890_v7, %v6906_v29  ;;  %v5275_v35 = vpop.trf.xlu1  ;;  %8210 = vxpose.xlu1.b32.cont [3/8] (short) (narrow) %v3932_v51, 32 }
 0x4a9   : > { %v6907_v44 = vcombine.low %v5211_v50, %v5275_v35  ;;  %v6908_v45 = vcombine.high %v5211_v50, %v5275_v35  ;;  %v6947_v56 = vrot.slane %v6939_v26, %v10075_v43  ;;  %v6954_v8 = vrot.slane %v6940_v54, %v10075_v43 }
 0x4aa   : > { %v5307_v52 = vpop.trf.xlu0  ;;  %8339 = vxpose.xlu0.b32.cont [3/8] (short) (narrow) %v3940_v25, 32  ;;  %v6963_v27 = vrot.slane %v6955_v28, %v10075_v43  ;;  %v6970_v33 = vrot.slane %v6956_v15, %v10075_v43  ;;  %v3943_v25 = vld [vmem:[%s10255_s7 + $0x168] sm:$0xff] }
 0x4ab   : > { %v6923_v5 = vcombine.low %v5243_v37, %v5307_v52  ;;  %v6924_v34 = vcombine.high %v5243_v37, %v5307_v52  ;;  %v6915_v55 = vrot.slane %v6907_v44, %v10073_v41  ;;  %v6922_v21 = vrot.slane %v6908_v45, %v10073_v41 }
 0x4ac   : > { %v5339_v59 = vpop.trf.xlu1  ;;  %8211 = vxpose.xlu1.b32.cont [4/8] (short) (narrow) %v3933_v40, 32 }
 0x4ad   : > { %v6931_v10 = vrot.slane %v6923_v5, %v10073_v41  ;;  %v6938_v12 = vrot.slane %v6924_v34, %v10073_v41  ;;  %v3936_v5 = vld [vmem:[%s10255_s7 + $0x130] sm:$0xff] }
 0x4ae   : > { %v5371_v14 = vpop.trf.xlu0  ;;  %8340 = vxpose.xlu0.b32.cont [4/8] (short) (narrow) %v3941_v57, 32 }
 0x4af   : > { %v6971_v4 = vcombine.low %v6915_v55, %v6931_v10  ;;  %v6972_v46 = vcombine.high %v6915_v55, %v6931_v10  ;;  %v6987_v13 = vcombine.low %v6922_v21, %v6938_v12  ;;  %v6988_v22 = vcombine.high %v6922_v21, %v6938_v12 }
 0x4b0   : > { %v5403_v2 = vpop.trf.xlu1  ;;  %8212 = vxpose.xlu1.b32.cont [5/8] (short) (narrow) %v3934_v18, 32 }
 0x4b1   : > { %v7011_v60 = vcombine.low %v5339_v59, %v5403_v2  ;;  %v7012_v11 = vcombine.high %v5339_v59, %v5403_v2  ;;  %v6979_v7 = vrot.slane %v6971_v4, %v10075_v43  ;;  %v6986_v42 = vrot.slane %v6972_v46, %v10075_v43  ;;  %v3944_v4 = vld [vmem:[%s10255_s7 + $0x170] sm:$0xff] }
 0x4b2   : > { %v5435_v3 = vpop.trf.xlu0  ;;  %8341 = vxpose.xlu0.b32.cont [5/8] (short) (narrow) %v3942_v6, 32  ;;  %v6995_v50 = vrot.slane %v6987_v13, %v10075_v43  ;;  %v7002_v29 = vrot.slane %v6988_v22, %v10075_v43  ;;  %v3937_v6 = vld [vmem:[%s10255_s7 + $0x138] sm:$0xff] }
 0x4b3   : > { %v7019_v51 = vrot.slane %v7011_v60, %v10073_v41  ;;  %v7026_v37 = vrot.slane %v7012_v11, %v10073_v41  ;;  %v7027_v26 = vcombine.low %v5371_v14, %v5435_v3  ;;  %v7028_v54 = vcombine.high %v5371_v14, %v5435_v3  ;;  %v3945_v60 = vld [vmem:[%s10255_s7 + $0x178] sm:$0xff] }
 0x4b4   : > { %v5467_v35 = vpop.trf.xlu1  ;;  %8213 = vxpose.xlu1.b32.cont [6/8] (short) (narrow) %v3935_v9, 32  ;;  %v10912_v44 = vcombine.low %v6947_v56, %v6979_v7  ;;  %v10914_v45 = vcombine.high %v6947_v56, %v6979_v7  ;;  %v10916_v28 = vcombine.low %v6954_v8, %v6986_v42  ;;  %v10918_v40 = vcombine.high %v6954_v8, %v6986_v42 }
 0x4b5   : > { %v7035_v15 = vrot.slane %v7027_v26, %v10073_v41  ;;  %v7042_v52 = vrot.slane %v7028_v54, %v10073_v41  ;;  %v10923_v34 = vcombine.low %v6963_v27, %v6995_v50  ;;  %v10925_v57 = vcombine.high %v6963_v27, %v6995_v50  ;;  %v3946_v27 = vld [vmem:[%s10255_s7 + $0x180] sm:$0xff] }
 0x4b6   : > { %11549 = vst [vmem:[#allocation10_spill] sm:$0xff] %v10916_v28  ;;  %11550 = vst [vmem:[#allocation21_spill] sm:$0xff] %v10918_v40  ;;  %v5499_v59 = vpop.trf.xlu0  ;;  %8342 = vxpose.xlu0.b32.cont [6/8] (short) (narrow) %v3943_v25, 32  ;;  %v10927_v55 = vcombine.low %v6970_v33, %v7002_v29  ;;  %v10929_v21 = vcombine.high %v6970_v33, %v7002_v29  ;;  %v3954_v26 = vld [vmem:[%s10255_s7 + $0x1c0] sm:$0xff] }
 0x4b7   : > { %11551 = vst [vmem:[#allocation22_spill] sm:$0xff] %v10923_v34  ;;  %11552 = vst [vmem:[#allocation24_spill] sm:$0xff] %v10925_v57  ;;  %v7075_v10 = vcombine.low %v7019_v51, %v7035_v15  ;;  %v7076_v12 = vcombine.high %v7019_v51, %v7035_v15  ;;  %v7091_v18 = vcombine.low %v7026_v37, %v7042_v52 }
 0x4b8   : > { %11553 = vst [vmem:[#allocation15_spill] sm:$0xff] %v10927_v55  ;;  %11554 = vst [vmem:[#allocation16_spill] sm:$0xff] %v10929_v21  ;;  %v7092_v14 = vcombine.high %v7026_v37, %v7042_v52  ;;  %v5531_v46 = vpop.trf.xlu1  ;;  %8214 = vxpose.xlu1.b32.cont [7/8] (short) (narrow) %v3936_v5, 32  ;;  %v3947_v5 = vld [vmem:[%s10255_s7 + $0x188] sm:$0xff]  ;;  %v3960_v21 = vld [vmem:[%s10255_s7 + $0x1f0] sm:$0xff] }
 0x4b9   : > { %v7043_v13 = vcombine.low %v5467_v35, %v5531_v46  ;;  %v7044_v22 = vcombine.high %v5467_v35, %v5531_v46  ;;  %v7083_v25 = vrot.slane %v7075_v10, %v10075_v43  ;;  %v7090_v35 = vrot.slane %v7076_v12, %v10075_v43 }
 0x4ba   : > { %v5563_v2 = vpop.trf.xlu0  ;;  %8343 = vxpose.xlu0.b32.cont [7/8] (short) (narrow) %v3944_v4, 32 }
 0x4bb   : > { %v7059_v56 = vcombine.low %v5499_v59, %v5563_v2  ;;  %v7060_v8 = vcombine.high %v5499_v59, %v5563_v2  ;;  %v7051_v9 = vrot.slane %v7043_v13, %v10073_v41  ;;  %v7058_v7 = vrot.slane %v7044_v22, %v10073_v41 }
 0x4bc   : > { %v5595_v11 = vpop.trf.xlu1  ;;  %8215 = vxpose.xlu1.b32.end [8/8] (short) (narrow) %v3937_v6, 32  ;;  %v7099_v13 = vrot.slane %v7091_v18, %v10075_v43  ;;  %v7106_v6 = vrot.slane %v7092_v14, %v10075_v43 }
 0x4bd   : > { %v7067_v42 = vrot.slane %v7059_v56, %v10073_v41  ;;  %v7074_v3 = vrot.slane %v7060_v8, %v10073_v41 }
 0x4be   : > { %v5627_v50 = vpop.trf.xlu0  ;;  %8344 = vxpose.xlu0.b32.end [8/8] (short) (narrow) %v3945_v60, 32  ;;  %v3955_v60 = vld [vmem:[%s10255_s7 + $0x1c8] sm:$0xff] }
 0x4bf   : > { %v7107_v33 = vcombine.low %v7051_v9, %v7067_v42  ;;  %v7108_v29 = vcombine.high %v7051_v9, %v7067_v42  ;;  %v7123_v51 = vcombine.low %v7058_v7, %v7074_v3  ;;  %v7124_v37 = vcombine.high %v7058_v7, %v7074_v3 }
 0x4c0   : > { %v5659_v54 = vpop.trf.xlu1  ;;  %8466 = vxpose.xlu1.b32.start [1/8] (short) (narrow) %v3946_v27, 32  ;;  %v3948_v27 = vld [vmem:[%s10255_s7 + $0x190] sm:$0xff] }
 0x4c1   : > { %v7147_v15 = vcombine.low %v5595_v11, %v5659_v54  ;;  %v7148_v52 = vcombine.high %v5595_v11, %v5659_v54  ;;  %v7115_v59 = vrot.slane %v7107_v33, %v10075_v43  ;;  %v7122_v4 = vrot.slane %v7108_v29, %v10075_v43 }
 0x4c2   : > { %v5691_v46 = vpop.trf.xlu0  ;;  %8595 = vxpose.xlu0.b32.start [1/8] (short) (narrow) %v3954_v26, 32  ;;  %v7131_v22 = vrot.slane %v7123_v51, %v10075_v43  ;;  %v7138_v10 = vrot.slane %v7124_v37, %v10075_v43 }
 0x4c3   : > { %v10950_v12 = vrot.slane %v7147_v15, %v10073_v41  ;;  %v7162_v2 = vrot.slane %v7148_v52, %v10073_v41  ;;  %v7163_v56 = vcombine.low %v5627_v50, %v5691_v46  ;;  %v7164_v8 = vcombine.high %v5627_v50, %v5691_v46  ;;  %v3956_v15 = vld [vmem:[%s10255_s7 + $0x1d0] sm:$0xff] }
 0x4c4   : > { %v10954_v11 = vpop.trf.xlu1  ;;  %8467 = vxpose.xlu1.b32.cont [2/8] (short) (narrow) %v3947_v5, 32  ;;  %v10956_v9 = vcombine.low %v7083_v25, %v7115_v59  ;;  %v10958_v18 = vcombine.high %v7083_v25, %v7115_v59  ;;  %v10960_v7 = vcombine.low %v7090_v35, %v7122_v4  ;;  %v10962_v14 = vcombine.high %v7090_v35, %v7122_v4  ;;  %v3949_v59 = vld [vmem:[%s10255_s7 + $0x198] sm:$0xff] }
 0x4c5   : > { %v10965_v42 = vrot.slane %v7163_v56, %v10073_v41  ;;  %v7178_v3 = vrot.slane %v7164_v8, %v10073_v41  ;;  %v10969_v50 = vcombine.low %v7099_v13, %v7131_v22  ;;  %v10971_v33 = vcombine.high %v7099_v13, %v7131_v22  ;;  %v3957_v13 = vld [vmem:[%s10255_s7 + $0x1d8] sm:$0xff] }
 0x4c6   : > { %v10973_v29 = vpop.trf.xlu0  ;;  %8596 = vxpose.xlu0.b32.cont [2/8] (short) (narrow) %v3955_v60, 32  ;;  %v10975_v51 = vcombine.low %v7106_v6, %v7138_v10  ;;  %v10977_v37 = vcombine.high %v7106_v6, %v7138_v10 }
 0x4c7   : > { %11555 = vst [vmem:[#allocation11_spill] sm:$0xff] %v10969_v50  ;;  %11556 = vst [vmem:[#allocation12_spill] sm:$0xff] %v10971_v33  ;;  %v7227_v25 = vcombine.low %v7162_v2, %v7178_v3  ;;  %v7228_v35 = vcombine.high %v7162_v2, %v7178_v3  ;;  %v3950_v2 = vld [vmem:[%s10255_s7 + $0x1a0] sm:$0xff] }
 0x4c8   : > { %11557 = vst [vmem:[#allocation26_spill] sm:$0xff] %v10975_v51  ;;  %11558 = vst [vmem:[#allocation27_spill] sm:$0xff] %v10977_v37  ;;  %v10984_v52 = vpop.trf.xlu1  ;;  %8468 = vxpose.xlu1.b32.cont [3/8] (short) (narrow) %v3948_v27, 32  ;;  %v3958_v3 = vld [vmem:[%s10255_s7 + $0x1e0] sm:$0xff] }
 0x4c9   : > { %v7180_v5 = vcombine.high %v10954_v11, %v10984_v52 }
 0x4ca   : > { %v10989_v4 = vpop.trf.xlu0  ;;  %8597 = vxpose.xlu0.b32.cont [3/8] (short) (narrow) %v3956_v15, 32 }
 0x4cb   : > { %v7196_v46 = vcombine.high %v10973_v29, %v10989_v4  ;;  %v7194_v6 = vrot.slane %v7180_v5, %v10073_v41 }
 0x4cc   : > { %v10994_v22 = vpop.trf.xlu1  ;;  %8469 = vxpose.xlu1.b32.cont [4/8] (short) (narrow) %v3949_v59, 32  ;;  %v3951_v59 = vld [vmem:[%s10255_s7 + $0x1a8] sm:$0xff] }
 0x4cd   : > { %v7210_v10 = vrot.slane %v7196_v46, %v10073_v41 }
 0x4ce   : > { %v10999_v56 = vpop.trf.xlu0  ;;  %8598 = vxpose.xlu0.b32.cont [4/8] (short) (narrow) %v3957_v13, 32 }
 0x4cf   : > { %v7259_v8 = vcombine.low %v7194_v6, %v7210_v10  ;;  %v7260_v60 = vcombine.high %v7194_v6, %v7210_v10  ;;  %v3959_v6 = vld [vmem:[%s10255_s7 + $0x1e8] sm:$0xff]  ;;  %v7235_v10 = vrot.slane %v7227_v25, %v10075_v43 }
 0x4d0   : > { %v11002_v27 = vpop.trf.xlu1  ;;  %8470 = vxpose.xlu1.b32.cont [5/8] (short) (narrow) %v3950_v2, 32  ;;  %v7242_v2 = vrot.slane %v7228_v35, %v10075_v43 }
 0x4d1   : > { %v7284_v15 = vcombine.high %v10994_v22, %v11002_v27  ;;  %v7267_v5 = vrot.slane %v7259_v8, %v10075_v43  ;;  %v7274_v46 = vrot.slane %v7260_v60, %v10075_v43  ;;  %v3952_v8 = vld [vmem:[%s10255_s7 + $0x1b0] sm:$0xff] }
 0x4d2   : > { %v11007_v54 = vpop.trf.xlu0  ;;  %8599 = vxpose.xlu0.b32.cont [5/8] (short) (narrow) %v3958_v3, 32 }
 0x4d3   : > { %v7300_v13 = vcombine.high %v10999_v56, %v11007_v54  ;;  %v7298_v24 = vrot.slane %v7284_v15, %v10073_v41  ;;  %v11021_v58 = vcombine.low %v7235_v10, %v7267_v5  ;;  %v11023_v60 = vcombine.high %v7235_v10, %v7267_v5  ;;  %v3961_v10 = vld [vmem:[%s10255_s7 + $0x1f8] sm:$0xff] }
 0x4d4   : > { %v11015_v26 = vpop.trf.xlu1  ;;  %8471 = vxpose.xlu1.b32.cont [6/8] (short) (narrow) %v3951_v59, 32  ;;  %v11027_v25 = vcombine.low %v7242_v2, %v7274_v46  ;;  %v11029_v38 = vcombine.high %v7242_v2, %v7274_v46 }
 0x4d5   : > { %v7314_v3 = vrot.slane %v7300_v13, %v10073_v41  ;;  %11559 = vst [vmem:[#allocation28_spill] sm:$0xff] %v11021_v58  ;;  %11560 = vst [vmem:[#allocation29_spill] sm:$0xff] %v11023_v60  ;;  %v3953_v13 = vld [vmem:[%s10255_s7 + $0x1b8] sm:$0xff]  ;;  %v7195_v60 = vcombine.low %v10973_v29, %v10989_v4  ;;  %v7299_v58 = vcombine.low %v10999_v56, %v11007_v54  ;;  %s11394_s7 = scalar_lea.hbm %s11448_s5, %s9280_s23 }
 0x4d6   : > { %v11025_v19 = vpop.trf.xlu0  ;;  %8600 = vxpose.xlu0.b32.cont [6/8] (short) (narrow) %v3959_v6, 32  ;;  %11561 = vst [vmem:[#allocation30_spill] sm:$0xff] %v11027_v25  ;;  %11562 = vst [vmem:[#allocation31_spill] sm:$0xff] %v11029_v38  ;;  %v7179_v29 = vcombine.low %v10954_v11, %v10984_v52  ;;  %v7283_v54 = vcombine.low %v10994_v22, %v11002_v27 }
 0x4d7   : > { %v7363_v59 = vcombine.low %v7298_v24, %v7314_v3  ;;  %v7364_v35 = vcombine.high %v7298_v24, %v7314_v3  ;;  %v11129_v52 = vrot.slane %v7195_v60, %v10073_v41  ;;  %v11132_v22 = vrot.slane %v7299_v58, %v10073_v41 }
 0x4d8   : > { %v11032_v55 = vpop.trf.xlu1  ;;  %8472 = vxpose.xlu1.b32.cont [7/8] (short) (narrow) %v3952_v8, 32  ;;  %v11150_v58 = vrot.slane %v7283_v54, %v10073_v41 }
 0x4d9   : > { %v7316_v15 = vcombine.high %v11015_v26, %v11032_v55  ;;  %v7371_v31 = vrot.slane %v7363_v59, %v10075_v43 }
 0x4da   : > { %v6075_v37 = vpop.trf.xlu0  ;;  %8601 = vxpose.xlu0.b32.cont [7/8] (short) (narrow) %v3960_v21, 32 }
 0x4db   : > { %v7332_v5 = vcombine.high %v11025_v19, %v6075_v37  ;;  %v7330_v46 = vrot.slane %v7316_v15, %v10073_v41  ;;  %v7378_v15 = vrot.slane %v7364_v35, %v10075_v43  ;;  %v7331_v59 = vcombine.low %v11025_v19, %v6075_v37 }
 0x4dc   : > { %v6107_v6 = vpop.trf.xlu1  ;;  %8473 = vxpose.xlu1.b32.end [8/8] (short) (narrow) %v3953_v13, 32 }
 0x4dd   : > { %v7346_v2 = vrot.slane %v7332_v5, %v10073_v41 }
 0x4de   : > { %v6139_v24 = vpop.trf.xlu0  ;;  %8602 = vxpose.xlu0.b32.end [8/8] (short) (narrow) %v3961_v10, 32 }
 0x4df   : > { %v7395_v3 = vcombine.low %v7330_v46, %v7346_v2  ;;  %v7396_v51 = vcombine.high %v7330_v46, %v7346_v2 }
 0x4e0   : > { %v6171_v8 = vpop.trf.xlu1 }
 0x4e1   : > { %v7420_v38 = vcombine.high %v6107_v6, %v6171_v8  ;;  %v7403_v49 = vrot.slane %v7395_v3, %v10075_v43  ;;  %v7410_v21 = vrot.slane %v7396_v51, %v10075_v43 }
 0x4e2   : > { %v6203_v25 = vpop.trf.xlu0 }
 0x4e3   : > { %v7436_v17 = vcombine.high %v6139_v24, %v6203_v25  ;;  %v11048_v13 = vrot.slane %v7420_v38, %v10073_v41  ;;  %v11053_v10 = vcombine.low %v7371_v31, %v7403_v49  ;;  %v11055_v46 = vcombine.high %v7371_v31, %v7403_v49 }
 0x4e4   : > { %v11044_v1 = vpop.trf.xlu1  ;;  %v11059_v51 = vcombine.low %v7378_v15, %v7410_v21  ;;  %v11061_v3 = vcombine.high %v7378_v15, %v7410_v21 }
 0x4e5   : > { %11563 = vst [vmem:[#allocation32_spill] sm:$0xff] %v11048_v13  ;;  %v11051_v5 = vrot.slane %v7436_v17, %v10073_v41  ;;  %11565 = vst [vmem:[#allocation34_spill] sm:$0xff] %v11053_v10  ;;  %v7419_v10 = vcombine.low %v6107_v6, %v6171_v8 }
 0x4e6   : > { %11566 = vst [vmem:[#allocation35_spill] sm:$0xff] %v11055_v46  ;;  %v11057_v2 = vpop.trf.xlu0  ;;  %11567 = vst [vmem:[#allocation36_spill] sm:$0xff] %v11059_v51  ;;  %v7435_v51 = vcombine.low %v6139_v24, %v6203_v25  ;;  %v7315_v46 = vcombine.low %v11015_v26, %v11032_v55  ;;  %v11113_v55 = vrot.slane %v7331_v59, %v10073_v41 }
 0x4e7   : > { %11564 = vst [vmem:[#allocation33_spill] sm:$0xff] %v11051_v5  ;;  %11568 = vst [vmem:[#allocation37_spill] sm:$0xff] %v11061_v3  ;;  %v11138_v8 = vrot.slane %v7419_v10, %v10073_v41  ;;  %v11147_v59 = vrot.slane %v7179_v29, %v10073_v41 }
 0x4e8   : > { %v11067_v35 = vpop.trf.xlu1  ;;  %v11118_v4 = vrot.slane %v7435_v51, %v10073_v41  ;;  %v11135_v27 = vrot.slane %v7315_v46, %v10073_v41 }
 0x4e9   : > { %v7451_v33 = vcombine.low %v11044_v1, %v11067_v35 }
 0x4ea   : > { %v11069_v17 = vpop.trf.xlu0  ;;  %v7379_v10 = vcombine.low %v11135_v27, %v11113_v55  ;;  %v7483_v46 = vcombine.low %v11138_v8, %v11118_v4 }
 0x4eb   : > { %v7467_v15 = vcombine.low %v11057_v2, %v11069_v17  ;;  %v11121_v56 = vrot.slane %v7451_v33, %v10073_v41 }
 0x4ec   : > { %v11071_v57 = vpop.trf.xlu1  ;;  %v7491_v39 = vrot.slane %v7483_v46, %v10075_v43  ;;  %v7387_v16 = vrot.slane %v7379_v10, %v10075_v43  ;;  %v11569_v46 = vcombine.low %v10950_v12, %v10965_v42 }
 0x4ed   : > { %v11101_v37 = vrot.slane %v7467_v15, %v10073_v41  ;;  %v7243_v15 = vcombine.low %v11147_v59, %v11129_v52 }
 0x4ee   : > { %v11073_v49 = vpop.trf.xlu0 }
 0x4ef   : > { %v7515_v33 = vcombine.low %v11121_v56, %v11101_v37  ;;  %v7251_v20 = vrot.slane %v7243_v15, %v10075_v43 }
 0x4f0   : > { %v11075_v31 = vpop.trf.xlu1 }
 0x4f1   : > { %v7555_v50 = vcombine.low %v11071_v57, %v11075_v31  ;;  %v7523_v54 = vrot.slane %v7515_v33, %v10075_v43 }
 0x4f2   : > { %v11077_v34 = vpop.trf.xlu0 }
 0x4f3   : > { %v7571_v38 = vcombine.low %v11073_v49, %v11077_v34  ;;  %v11124_v6 = vrot.slane %v7555_v50, %v10073_v41  ;;  %v7547_v61 = vcombine.low %v7491_v39, %v7523_v54  ;;  %v7548_v40 = vcombine.high %v7491_v39, %v7523_v54  ;;  %v11576_v54 = vld [vmem:[#allocation8_spill] sm:$0xff] }
 0x4f4   : > { %v11079_v21 = vpop.trf.xlu1 }
 0x4f5   : > { %v11104_v25 = vrot.slane %v7571_v38, %v10073_v41 }
 0x4f6   : > { %v11086_v3 = vpop.trf.xlu0 }
 0x4f7   : > { %v7619_v50 = vcombine.low %v11124_v6, %v11104_v25 }
 0x4f8   : > { %v11098_v19 = vpop.trf.xlu1 }
 0x4f9   : > { %v7587_v24 = vcombine.low %v11079_v21, %v11098_v19 }
 0x4fa   : > { %v11115_v26 = vpop.trf.xlu0 }
 0x4fb   : > { %v7603_v11 = vcombine.low %v11086_v3, %v11115_v26  ;;  %v7595_v51 = vrot.slane %v7587_v24, %v10073_v41  ;;  %v7347_v24 = vcombine.low %v11150_v58, %v11132_v22 }
 0x4fd   : > { %v7611_v60 = vrot.slane %v7603_v11, %v10073_v41  ;;  %v7627_v11 = vrot.slane %v7619_v50, %v10075_v43  ;;  %v7355_v28 = vrot.slane %v7347_v24, %v10075_v43 }
 0x4ff   : > { %v7651_v38 = vcombine.low %v7595_v51, %v7611_v60  ;;  %v7411_v50 = vcombine.low %v7355_v28, %v7387_v16  ;;  %v7412_v33 = vcombine.high %v7355_v28, %v7387_v16  ;;  %v7652_v39 = vcombine.high %v7595_v51, %v7611_v60  ;;  %v11184_v28 = vpop.trf.xlu0  ;;  %v11572_v51 = vld [vmem:[#allocation21_spill] sm:$0xff] }
 0x500   : > { %v7620_v16 = vcombine.high %v11124_v6, %v11104_v25 }
 0x501   : > { %v7659_v29 = vrot.slane %v7651_v38, %v10075_v43  ;;  %v7219_v38 = vrot.slane %v11569_v46, %v10075_v43  ;;  %v11577_v46 = vld [vmem:[#allocation32_spill] sm:$0xff] }
 0x503   : > { %v7683_v5 = vcombine.low %v7627_v11, %v7659_v29  ;;  %v7684_v13 = vcombine.high %v7627_v11, %v7659_v29  ;;  %v7275_v10 = vcombine.low %v7219_v38, %v7251_v20  ;;  %v7276_v15 = vcombine.high %v7219_v38, %v7251_v20  ;;  %v11575_v29 = vld [vmem:[#allocation6_spill] sm:$0xff]  ;;  %v11578_v38 = vld [vmem:[#allocation33_spill] sm:$0xff] }
 0x504   : > { %v7666_v20 = vrot.slane %v7652_v39, %v10075_v43 }
 0x505   : > { %9637 = vmatprep.subr.mxu0 %v7683_v5  ;;  %9659 = vmatprep.subr.mxu1 %v7684_v13 }
 0x506   : > { %9638 = vmatpush3.msra.mxu0 %v7683_v5  ;;  %9660 = vmatpush3.msra.mxu1 %v7684_v13  ;;  %v7348_v13 = vcombine.high %v11150_v58, %v11132_v22  ;;  %v11573_v58 = vld [vmem:[#allocation18_spill] sm:$0xff] }
 0x507   : > { %9639 = vmatprep.subr.mxu0 %v7547_v61  ;;  %9661 = vmatprep.subr.mxu1 %v7548_v40 }
 0x508   : > { %9640 = vmatpush3.msra.mxu0 %v7547_v61  ;;  %9662 = vmatpush3.msra.mxu1 %v7548_v40  ;;  %v7516_v61 = vcombine.high %v11121_v56, %v11101_v37  ;;  %v11186_v40 = vpop.trf.xlu1  ;;  %v7604_v56 = vcombine.high %v11086_v3, %v11115_v26  ;;  %v7588_v3 = vcombine.high %v11079_v21, %v11098_v19 }
 0x509   : > { %9641 = vmatprep.subr.mxu0 %v7411_v50  ;;  %9663 = vmatprep.subr.mxu1 %v7412_v33 }
 0x50a   : > { %9642 = vmatpush3.msra.mxu0 %v7411_v50  ;;  %9664 = vmatpush3.msra.mxu1 %v7412_v33  ;;  %v7530_v5 = vrot.slane %v7516_v61, %v10075_v43 }
 0x50b   : > { %9643 = vmatprep.subr.mxu0 %v7275_v10  ;;  %9665 = vmatprep.subr.mxu1 %v7276_v15 }
 0x50c   : > { %9644 = vmatpush3.msra.mxu0 %v7275_v10  ;;  %9666 = vmatpush3.msra.mxu1 %v7276_v15  ;;  %v11579_v10 = vcombine.low %v11577_v46, %v11578_v38 }
 0x50d   : > { %9645 = vmatprep.subr.mxu0 %v10956_v9  ;;  %9667 = vmatprep.subr.mxu1 %v10958_v18 }
 0x50e   : > { %9646 = vmatpush3.msra.mxu0 %v10956_v9  ;;  %9668 = vmatpush3.msra.mxu1 %v10958_v18  ;;  %v7380_v9 = vcombine.high %v11135_v27, %v11113_v55  ;;  %v7484_v18 = vcombine.high %v11138_v8, %v11118_v4  ;;  %v11213_v4 = vpop.trf.xlu0  ;;  %v7572_v27 = vcombine.high %v11073_v49, %v11077_v34  ;;  %v11571_v8 = vld [vmem:[#allocation10_spill] sm:$0xff] }
 0x50f   : > { %9647 = vmatprep.subr.mxu0 %v10912_v44  ;;  %9669 = vmatprep.subr.mxu1 %v10914_v45  ;;  %v11243_v34 = vrot.slane %v7604_v56, %v10073_v41  ;;  %v7507_v15 = vrot.slane %v11579_v10, %v10075_v43 }
 0x510   : > { %9648 = vmatpush3.msra.mxu0 %v10912_v44  ;;  %9670 = vmatpush3.msra.mxu1 %v10914_v45  ;;  %v7244_v44 = vcombine.high %v11147_v59, %v11129_v52  ;;  %v7634_v45 = vrot.slane %v7620_v16, %v10075_v43 }
 0x511   : > { %9649 = vmatprep.subr.mxu0 %v10872_v63  ;;  %9671 = vmatprep.subr.mxu1 %v10874_v36 }
 0x512   : > { %9650 = vmatpush3.msra.mxu0 %v10872_v63  ;;  %9672 = vmatpush3.msra.mxu1 %v10874_v36  ;;  %v7685_v37 = vcombine.low %v7634_v45, %v7666_v20  ;;  %v7686_v25 = vcombine.high %v7634_v45, %v7666_v20  ;;  %v7498_v63 = vrot.slane %v7484_v18, %v10075_v43  ;;  %v11583_v45 = vld [vmem:[#allocation29_spill] sm:$0xff] }
 0x513   : > { %9651 = vmatprep.subr.mxu0 %v10832_v23  ;;  %9673 = vmatprep.subr.mxu1 %v10834_v32  ;;  %v7394_v36 = vrot.slane %v7380_v9, %v10075_v43  ;;  %v7258_v55 = vrot.slane %v7244_v44, %v10075_v43  ;;  %v11582_v44 = vld [vmem:[#allocation28_spill] sm:$0xff] }
 0x514   : > { %9652 = vmatpush3.msra.mxu0 %v10832_v23  ;;  %9674 = vmatpush3.msra.mxu1 %v10834_v32  ;;  %v11215_v23 = vpop.trf.xlu1  ;;  %v7362_v32 = vrot.slane %v7348_v13, %v10075_v43 }
 0x515   : > { %9654 = vmatmul.mubr.msk.f32.vlgmr.msra.gmra.mxu0 %vm7723_vm1, %v10662_v53  ;;  %9676 = vmatmul.mubr.msk.f32.vlgmr.msra.gmra.mxu1 %vm7723_vm1, %v10664_v48  ;;  %v7549_v53 = vcombine.low %v7498_v63, %v7530_v5  ;;  %v7550_v48 = vcombine.high %v7498_v63, %v7530_v5  ;;  %v11584_v5 = vld [vmem:[#allocation11_spill] sm:$0xff] }
 0x516   : > { %9681 = vmatprep.subr.mxu0 %v7685_v37  ;;  %9703 = vmatprep.subr.mxu1 %v7686_v25  ;;  %v7413_v6 = vcombine.low %v7362_v32, %v7394_v36  ;;  %v7414_v52 = vcombine.high %v7362_v32, %v7394_v36 }
 0x517   : > { %9656 = vmatprep.mubr.msk.f32.mxu0 %vm7723_vm1, %v10666_v30  ;;  %9678 = vmatprep.mubr.msk.f32.mxu1 %vm7723_vm1, %v10668_v47  ;;  %v11570_v30 = vcombine.high %v10950_v12, %v10965_v42  ;;  %v7468_v47 = vcombine.high %v11057_v2, %v11069_v17  ;;  %v7452_v42 = vcombine.high %v11044_v1, %v11067_v35  ;;  %v8097_v17 = vpop.trf.xlu0 }
 0x518   : > { %9682 = vmatpush3.msra.mxu0 %v7685_v37  ;;  %9704 = vmatpush3.msra.mxu1 %v7686_v25  ;;  %v7556_v2 = vcombine.high %v11071_v57, %v11075_v31  ;;  %v7968_v49 = vpop.trf.xlu1  ;;  %v11252_v1 = vrot.slane %v7588_v3, %v10073_v41  ;;  %v11585_v37 = vld [vmem:[#allocation12_spill] sm:$0xff] }
 0x519   : > { %9683 = vmatprep.subr.mxu0 %v7549_v53  ;;  %9705 = vmatprep.subr.mxu1 %v7550_v48  ;;  %v7226_v22 = vrot.slane %v11570_v30, %v10075_v43  ;;  %v11255_v57 = vrot.slane %v7452_v42, %v10073_v41 }
 0x51a   : > { %9684 = vmatpush3.msra.mxu0 %v7549_v53  ;;  %9706 = vmatpush3.msra.mxu1 %v7550_v48  ;;  %v11258_v35 = vrot.slane %v7556_v2, %v10073_v41  ;;  %v7667_v31 = vcombine.low %v11252_v1, %v11243_v34  ;;  %v7668_v13 = vcombine.high %v11252_v1, %v11243_v34  ;;  %v11588_v53 = vld [vmem:[#allocation13_spill] sm:$0xff]  ;;  %v11589_v48 = vld [vmem:[#allocation14_spill] sm:$0xff]  ;;  %v11596_v1 = vld [vmem:[#allocation31_spill] sm:$0xff] }
 0x51b   : > { %9657 = vmatmul.mubr.msk.f32.gmra.mxu0 %vm7723_vm1, %v10670_v62  ;;  %9679 = vmatmul.mubr.msk.f32.gmra.mxu1 %vm7723_vm1, %v10672_v0  ;;  %v7277_v26 = vcombine.low %v7226_v22, %v7258_v55  ;;  %v7278_v12 = vcombine.high %v7226_v22, %v7258_v55  ;;  %v11246_v62 = vrot.slane %v7468_v47, %v10073_v41  ;;  %v8098_v60 = vpop.trf.xlu0  ;;  %v11590_v22 = vld [vmem:[#allocation7_spill] sm:$0xff] }
 0x51c   : > { %9685 = vmatprep.subr.mxu0 %v7413_v6  ;;  %9707 = vmatprep.subr.mxu1 %v7414_v52  ;;  %v11249_v0 = vrot.slane %v7572_v27, %v10073_v41  ;;  %v7969_v59 = vpop.trf.xlu1  ;;  %v7682_v32 = vrot.slane %v7668_v13, %v10075_v43  ;;  %v11591_v47 = vld [vmem:[#allocation23_spill] sm:$0xff] }
 0x51d   : > { %9686 = vmatpush3.msra.mxu0 %v7413_v6  ;;  %9708 = vmatpush3.msra.mxu1 %v7414_v52  ;;  %v7531_v21 = vcombine.low %v11255_v57, %v11246_v62  ;;  %v7532_v36 = vcombine.high %v11255_v57, %v11246_v62  ;;  %v11594_v62 = vld [vmem:[#allocation37_spill] sm:$0xff] }
 0x51e   : > { %9687 = vmatprep.subr.mxu0 %v7277_v26  ;;  %9709 = vmatprep.subr.mxu1 %v7278_v12  ;;  %v7635_v19 = vcombine.low %v11258_v35, %v11249_v0  ;;  %v7636_v55 = vcombine.high %v11258_v35, %v11249_v0  ;;  %v11595_v0 = vld [vmem:[#allocation30_spill] sm:$0xff] }
 0x51f   : > { %9688 = vmatpush3.msra.mxu0 %v7277_v26  ;;  %9710 = vmatpush3.msra.mxu1 %v7278_v12  ;;  %v7539_v11 = vrot.slane %v7531_v21, %v10075_v43  ;;  %v8353_v39 = vpop.trf.xlu0  ;;  %v7546_v6 = vrot.slane %v7532_v36, %v10075_v43  ;;  %v11592_v26 = vcombine.high %v11577_v46, %v11578_v38  ;;  %v11598_v21 = vld [vmem:[#allocation27_spill] sm:$0xff] }
 0x520   : > { %9689 = vmatprep.subr.mxu0 %v10960_v7  ;;  %9711 = vmatprep.subr.mxu1 %v10962_v14  ;;  %v7643_v24 = vrot.slane %v7635_v19, %v10075_v43  ;;  %v8224_v16 = vpop.trf.xlu1  ;;  %v7650_v56 = vrot.slane %v7636_v55, %v10075_v43  ;;  %v11599_v19 = vld [vmem:[#allocation15_spill] sm:$0xff] }
 0x521   : > { %9690 = vmatpush3.msra.mxu0 %v10960_v7  ;;  %9712 = vmatpush3.msra.mxu1 %v10962_v14  ;;  %v11574_v7 = vld [vmem:[#allocation19_spill] sm:$0xff]  ;;  %v7675_v14 = vrot.slane %v7667_v31, %v10075_v43  ;;  %v7551_v61 = vcombine.low %v7507_v15, %v7539_v11  ;;  %v7552_v20 = vcombine.high %v7507_v15, %v7539_v11  ;;  %v11597_v31 = vld [vmem:[#allocation26_spill] sm:$0xff] }
 0x522   : > { %9691 = vmatprep.subr.mxu0 %v11571_v8  ;;  %9713 = vmatprep.subr.mxu1 %v11572_v51  ;;  %v7689_v27 = vcombine.low %v7650_v56, %v7682_v32  ;;  %v7690_v3 = vcombine.high %v7650_v56, %v7682_v32  ;;  %v7514_v12 = vrot.slane %v11592_v26, %v10075_v43 }
 0x523   : > { %9692 = vmatpush3.msra.mxu0 %v11571_v8  ;;  %9714 = vmatpush3.msra.mxu1 %v11572_v51  ;;  %v7687_v50 = vcombine.low %v7643_v24, %v7675_v14  ;;  %v7688_v33 = vcombine.high %v7643_v24, %v7675_v14  ;;  %v8354_v9 = vpop.trf.xlu0  ;;  %v11600_v8 = vld [vmem:[#allocation16_spill] sm:$0xff]  ;;  %v11604_v14 = vld [vmem:[#allocation25_spill] sm:$0xff] }
 0x524   : > { %9693 = vmatprep.subr.mxu0 %v11573_v58  ;;  %9715 = vmatprep.subr.mxu1 %v11574_v7  ;;  %v8225_v18 = vpop.trf.xlu1  ;;  %v7553_v42 = vcombine.low %v7514_v12, %v7546_v6  ;;  %v7554_v2 = vcombine.high %v7514_v12, %v7546_v6  ;;  %v11601_v51 = vld [vmem:[#allocation20_spill] sm:$0xff] }
 0x525   : > { %9694 = vmatpush3.msra.mxu0 %v11573_v58  ;;  %9697 = vmatprep.mubr.msk.f32.mxu0 %vm7723_vm1, %v11186_v40  ;;  %v11581_v40 = vld [vmem:[#allocation35_spill] sm:$0xff] }
 0x526   : > { %9716 = vmatpush3.msra.mxu1 %v11574_v7  ;;  %9719 = vmatprep.mubr.msk.f32.mxu1 %vm7723_vm1, %v11184_v28  ;;  %v11580_v28 = vld [vmem:[#allocation34_spill] sm:$0xff]  ;;  %v11603_v7 = vld [vmem:[#allocation17_spill] sm:$0xff] }
 0x527   : > { %9695 = vmatprep.subr.mxu0 %v11575_v29  ;;  %9717 = vmatprep.subr.mxu1 %v11576_v54  ;;  %v8355_v25 = vpop.trf.xlu0 }
 0x528   : > { %9696 = vmatpush3.msra.mxu0 %v11575_v29  ;;  %9718 = vmatpush3.msra.mxu1 %v11576_v54  ;;  %v8226_v63 = vpop.trf.xlu1 }
 0x529   : > { %9698 = vmatmul.mubr.msk.f32.vlgmr.msra.gmra.mxu0 %vm7723_vm1, %v11215_v23  ;;  %9720 = vmatmul.mubr.msk.f32.vlgmr.msra.gmra.mxu1 %vm7723_vm1, %v11213_v4  ;;  %v11586_v4 = vld [vmem:[#allocation22_spill] sm:$0xff]  ;;  %v11587_v23 = vld [vmem:[#allocation24_spill] sm:$0xff] }
 0x52a   : > { %9725 = vmatprep.subr.mxu0 %v7687_v50  ;;  %9747 = vmatprep.subr.mxu1 %v7688_v33 }
 0x52b   : > { %9726 = vmatpush3.msra.mxu0 %v7687_v50  ;;  %9748 = vmatpush3.msra.mxu1 %v7688_v33  ;;  %v8356_v52 = vpop.trf.xlu0 }
 0x52c   : > { %9727 = vmatprep.subr.mxu0 %v7551_v61  ;;  %9749 = vmatprep.subr.mxu1 %v7552_v20  ;;  %v8227_v30 = vpop.trf.xlu1 }
 0x52d   : > { %9728 = vmatpush3.msra.mxu0 %v7551_v61  ;;  %9750 = vmatpush3.msra.mxu1 %v7552_v20 }
 0x52e   : > { %9729 = vmatprep.subr.mxu0 %v11580_v28  ;;  %9751 = vmatprep.subr.mxu1 %v11581_v40 }
 0x52f   : > { %9700 = vmatprep.mubr.msk.f32.mxu0 %vm7723_vm1, %v7968_v49  ;;  %9722 = vmatprep.mubr.msk.f32.mxu1 %vm7723_vm1, %v8097_v17  ;;  %v11593_v49 = vld [vmem:[#allocation36_spill] sm:$0xff] }
 0x530   : > { %9730 = vmatpush3.msra.mxu0 %v11580_v28  ;;  %9752 = vmatpush3.msra.mxu1 %v11581_v40 }
 0x531   : > { %9731 = vmatprep.subr.mxu0 %v11582_v44  ;;  %9753 = vmatprep.subr.mxu1 %v11583_v45 }
 0x532   : > { %9701 = vmatmul.mubr.msk.f32.gmra.mxu0 %vm7723_vm1, %v7969_v59  ;;  %9723 = vmatmul.mubr.msk.f32.gmra.mxu1 %vm7723_vm1, %v8098_v60  ;;  %v11602_v60 = vld [vmem:[#allocation9_spill] sm:$0xff] }
 0x533   : > { %9732 = vmatpush3.msra.mxu0 %v11582_v44  ;;  %9754 = vmatpush3.msra.mxu1 %v11583_v45 }
 0x534   : > { %9733 = vmatprep.subr.mxu0 %v11584_v5  ;;  %9755 = vmatprep.subr.mxu1 %v11585_v37 }
 0x535   : > { %9734 = vmatpush3.msra.mxu0 %v11584_v5  ;;  %9756 = vmatpush3.msra.mxu1 %v11585_v37 }
 0x536   : > { %9735 = vmatprep.subr.mxu0 %v11586_v4  ;;  %9757 = vmatprep.subr.mxu1 %v11587_v23 }
 0x537   : > { %9736 = vmatpush3.msra.mxu0 %v11586_v4  ;;  %9758 = vmatpush3.msra.mxu1 %v11587_v23 }
 0x538   : > { %9737 = vmatprep.subr.mxu0 %v11588_v53  ;;  %9759 = vmatprep.subr.mxu1 %v11589_v48 }
 0x539   : > { %9738 = vmatpush3.msra.mxu0 %v11588_v53  ;;  %9741 = vmatprep.mubr.msk.f32.mxu0 %vm7723_vm1, %v8224_v16 }
 0x53a   : > { %9760 = vmatpush3.msra.mxu1 %v11589_v48  ;;  %9763 = vmatprep.mubr.msk.f32.mxu1 %vm7723_vm1, %v8353_v39 }
 0x53b   : > { %9739 = vmatprep.subr.mxu0 %v11590_v22  ;;  %9761 = vmatprep.subr.mxu1 %v11591_v47 }
 0x53c   : > { %9740 = vmatpush3.msra.mxu0 %v11590_v22  ;;  %9762 = vmatpush3.msra.mxu1 %v11591_v47  ;;  %v8482_v17 = vpop.trf.xlu1 }
 0x53d   : > { %9742 = vmatmul.mubr.msk.f32.vlgmr.msra.gmra.mxu0 %vm7723_vm1, %v8225_v18  ;;  %9764 = vmatmul.mubr.msk.f32.vlgmr.msra.gmra.mxu1 %vm7723_vm1, %v8354_v9 }
 0x53e   : > { %9769 = vmatprep.subr.mxu0 %v7689_v27  ;;  %9791 = vmatprep.subr.mxu1 %v7690_v3  ;;  %v8611_v34 = vpop.trf.xlu0 }
 0x53f   : > { %9770 = vmatpush3.msra.mxu0 %v7689_v27  ;;  %9792 = vmatpush3.msra.mxu1 %v7690_v3 }
 0x540   : > { %9771 = vmatprep.subr.mxu0 %v7553_v42  ;;  %9793 = vmatprep.subr.mxu1 %v7554_v2  ;;  %v8483_v35 = vpop.trf.xlu1 }
 0x541   : > { %9772 = vmatpush3.msra.mxu0 %v7553_v42  ;;  %9794 = vmatpush3.msra.mxu1 %v7554_v2 }
 0x542   : > { %9773 = vmatprep.subr.mxu0 %v11593_v49  ;;  %9795 = vmatprep.subr.mxu1 %v11594_v62  ;;  %v8612_v57 = vpop.trf.xlu0 }
 0x543   : > { %9744 = vmatprep.mubr.msk.f32.mxu0 %vm7723_vm1, %v8226_v63  ;;  %9766 = vmatprep.mubr.msk.f32.mxu1 %vm7723_vm1, %v8355_v25 }
 0x544   : > { %9774 = vmatpush3.msra.mxu0 %v11593_v49  ;;  %9796 = vmatpush3.msra.mxu1 %v11594_v62  ;;  %v8484_v58 = vpop.trf.xlu1 }
 0x545   : > { %9775 = vmatprep.subr.mxu0 %v11595_v0  ;;  %9797 = vmatprep.subr.mxu1 %v11596_v1 }
 0x546   : > { %9745 = vmatmul.mubr.msk.f32.gmra.mxu0 %vm7723_vm1, %v8227_v30  ;;  %9767 = vmatmul.mubr.msk.f32.gmra.mxu1 %vm7723_vm1, %v8356_v52  ;;  %v8613_v59 = vpop.trf.xlu0 }
 0x547   : > { %9776 = vmatpush3.msra.mxu0 %v11595_v0  ;;  %9798 = vmatpush3.msra.mxu1 %v11596_v1 }
 0x548   : > { %9777 = vmatprep.subr.mxu0 %v11597_v31  ;;  %9799 = vmatprep.subr.mxu1 %v11598_v21  ;;  %v8485_v11 = vpop.trf.xlu1 }
 0x549   : > { %9778 = vmatpush3.msra.mxu0 %v11597_v31  ;;  %9800 = vmatpush3.msra.mxu1 %v11598_v21 }
 0x54a   : > { %9779 = vmatprep.subr.mxu0 %v11599_v19  ;;  %9801 = vmatprep.subr.mxu1 %v11600_v8  ;;  %v8614_v24 = vpop.trf.xlu0 }
 0x54b   : > { %9780 = vmatpush3.msra.mxu0 %v11599_v19  ;;  %9802 = vmatpush3.msra.mxu1 %v11600_v8  ;;  %v3962_v19 = vld [vmem:[%s345_s17] sm:$0xff] }
 0x54c   : > { %9781 = vmatprep.subr.mxu0 %v11601_v51  ;;  %9803 = vmatprep.subr.mxu1 %v11602_v60 }
 0x54d   : > { %9782 = vmatpush3.msra.mxu0 %v11601_v51  ;;  %9785 = vmatprep.mubr.msk.f32.mxu0 %vm7723_vm1, %v8482_v17 }
 0x54e   : > { %9804 = vmatpush3.msra.mxu1 %v11602_v60  ;;  %9807 = vmatprep.mubr.msk.f32.mxu1 %vm7723_vm1, %v8611_v34 }
 0x54f   : > { %9783 = vmatprep.subr.mxu0 %v11603_v7  ;;  %9805 = vmatprep.subr.mxu1 %v11604_v14 }
 0x550   : > { %9784 = vmatpush3.msra.mxu0 %v11603_v7  ;;  %9806 = vmatpush3.msra.mxu1 %v11604_v14 }
 0x551   : > { %9786 = vmatmul.mubr.msk.f32.vlgmr.msra.gmra.mxu0 %vm7723_vm1, %v8483_v35  ;;  %9808 = vmatmul.mubr.msk.f32.vlgmr.msra.gmra.mxu1 %vm7723_vm1, %v8612_v57 }
 0x552   : > { %9788 = vmatprep.mubr.msk.f32.mxu0 %vm7723_vm1, %v8484_v58  ;;  %9810 = vmatprep.mubr.msk.f32.mxu1 %vm7723_vm1, %v8613_v59 }
 0x555   : > { %9789 = vmatmul.mubr.msk.f32.gmra.mxu0 %vm7723_vm1, %v8485_v11  ;;  %9811 = vmatmul.mubr.msk.f32.gmra.mxu1 %vm7723_vm1, %v8614_v24 }
 0x5d5   : > { %v9655_v29 = vpop.f32.mrf.mxu0  ;;  %v9677_v54 = vpop.f32.mrf.mxu1 }
 0x5d7   : > { %v7802_v50 = vpop.f32.mrf.mxu0  ;;  %v7931_v33 = vpop.f32.mrf.mxu1 }
 0x5d8   : > { %8756 = vxpose.xlu0.b32.start [1/4] (short) (narrow) %v7931_v33, 8  ;;  %8724 = vxpose.xlu1.b32.start [1/4] (short) (narrow) %v7802_v50, 8 }
 0x5db   : > { %v9658_v46 = vpop.f32.mrf.mxu0  ;;  %v9680_v38 = vpop.f32.mrf.mxu1 }
 0x5dc   : > { %8757 = vxpose.xlu0.b32.cont [2/4] (short) (narrow) %v9677_v54, 8  ;;  %8725 = vxpose.xlu1.b32.cont [2/4] (short) (narrow) %v9655_v29, 8 }
 0x5dd   : > { %v7812_v10 = vpop.f32.mrf.mxu0  ;;  %v7941_v15 = vpop.f32.mrf.mxu1 }
 0x5e0   : > { %8758 = vxpose.xlu0.b32.cont [3/4] (short) (narrow) %v7941_v15, 8  ;;  %8726 = vxpose.xlu1.b32.cont [3/4] (short) (narrow) %v7812_v10, 8 }
 0x5e4   : > { %8759 = vxpose.xlu0.b32.end [4/4] (short) (narrow) %v9680_v38, 8  ;;  %8727 = vxpose.xlu1.b32.end [4/4] (short) (narrow) %v9658_v46, 8 }
 0x5e9   : > { %v9699_v39 = vpop.f32.mrf.mxu0  ;;  %v9721_v16 = vpop.f32.mrf.mxu1 }
 0x5eb   : > { %v8060_v61 = vpop.f32.mrf.mxu0  ;;  %v8189_v20 = vpop.f32.mrf.mxu1 }
 0x5ec   : > { %8820 = vxpose.xlu0.b32.start [1/4] (short) (narrow) %v8189_v20, 8  ;;  %8788 = vxpose.xlu1.b32.start [1/4] (short) (narrow) %v8060_v61, 8 }
 0x5f0   : > { %8821 = vxpose.xlu0.b32.cont [2/4] (short) (narrow) %v9721_v16, 8  ;;  %8789 = vxpose.xlu1.b32.cont [2/4] (short) (narrow) %v9699_v39, 8 }
 0x5f2   : > { %v9724_v28 = vpop.f32.mrf.mxu1  ;;  %v9702_v40 = vpop.f32.mrf.mxu0 }
 0x5f4   : > { %v8070_v9 = vpop.f32.mrf.mxu0  ;;  %v8199_v18 = vpop.f32.mrf.mxu1 }
 0x5f5   : > { %8822 = vxpose.xlu0.b32.cont [3/4] (short) (narrow) %v8199_v18, 8  ;;  %8790 = vxpose.xlu1.b32.cont [3/4] (short) (narrow) %v8070_v9, 8 }
 0x5f9   : > { %8823 = vxpose.xlu0.b32.end [4/4] (short) (narrow) %v9724_v28, 8  ;;  %8791 = vxpose.xlu1.b32.end [4/4] (short) (narrow) %v9702_v40, 8 }
 0x5fd   : > { %v9743_v44 = vpop.f32.mrf.mxu0  ;;  %v9765_v45 = vpop.f32.mrf.mxu1 }
 0x5ff   : > { %v8318_v13 = vpop.f32.mrf.mxu0  ;;  %v8447_v5 = vpop.f32.mrf.mxu1 }
 0x600   : > { %8884 = vxpose.xlu0.b32.start [1/4] (short) (narrow) %v8447_v5, 8  ;;  %8852 = vxpose.xlu1.b32.start [1/4] (short) (narrow) %v8318_v13, 8 }
 0x604   : > { %8885 = vxpose.xlu0.b32.cont [2/4] (short) (narrow) %v9765_v45, 8  ;;  %8853 = vxpose.xlu1.b32.cont [2/4] (short) (narrow) %v9743_v44, 8 }
 0x606   : > { %v9768_v37 = vpop.f32.mrf.mxu1  ;;  %v9746_v25 = vpop.f32.mrf.mxu0 }
 0x608   : > { %v8328_v63 = vpop.f32.mrf.mxu0  ;;  %v8457_v36 = vpop.f32.mrf.mxu1 }
 0x609   : > { %8886 = vxpose.xlu0.b32.cont [3/4] (short) (narrow) %v8457_v36, 8  ;;  %8854 = vxpose.xlu1.b32.cont [3/4] (short) (narrow) %v8328_v63, 8 }
 0x60d   : > { %8887 = vxpose.xlu0.b32.end [4/4] (short) (narrow) %v9768_v37, 8  ;;  %8855 = vxpose.xlu1.b32.end [4/4] (short) (narrow) %v9746_v25, 8 }
 0x611   : > { %v9787_v55 = vpop.f32.mrf.mxu0  ;;  %v9809_v4 = vpop.f32.mrf.mxu1 }
 0x613   : > { %v8576_v23 = vpop.f32.mrf.mxu0  ;;  %v8705_v53 = vpop.f32.mrf.mxu1 }
 0x614   : > { %8948 = vxpose.xlu0.b32.start [1/4] (short) (narrow) %v8705_v53, 8  ;;  %8916 = vxpose.xlu1.b32.start [1/4] (short) (narrow) %v8576_v23, 8 }
 0x615   : > { %v9812_v48 = vpop.f32.mrf.mxu1  ;;  %v9790_v32 = vpop.f32.mrf.mxu0 }
 0x617   : > { %v8586_v56 = vpop.f32.mrf.mxu0  ;;  %v8715_v6 = vpop.f32.mrf.mxu1 }
 0x618   : > { %8949 = vxpose.xlu0.b32.cont [2/4] (short) (narrow) %v9809_v4, 8  ;;  %8917 = vxpose.xlu1.b32.cont [2/4] (short) (narrow) %v9787_v55, 8 }
 0x61c   : > { %8950 = vxpose.xlu0.b32.cont [3/4] (short) (narrow) %v8715_v6, 8  ;;  %8918 = vxpose.xlu1.b32.cont [3/4] (short) (narrow) %v8586_v56, 8 }
 0x620   : > { %8951 = vxpose.xlu0.b32.end [4/4] (short) (narrow) %v9812_v48, 8  ;;  %8919 = vxpose.xlu1.b32.end [4/4] (short) (narrow) %v9790_v32, 8 }
 0x654   : > { %v8772_v52 = vpop.trf.xlu0  ;;  %v8740_v30 = vpop.trf.xlu1 }
 0x669   : > { %v8836_v22 = vpop.trf.xlu0  ;;  %v8804_v47 = vpop.trf.xlu1 }
 0x66a   : > { %v8988_v26 = vcombine.low %v8772_v52, %v8836_v22  ;;  %v8980_v12 = vcombine.low %v8740_v30, %v8804_v47 }
 0x66c   : > { %v8995_v42 = vrot.slane %v8988_v26, %v10073_v41  ;;  %v8987_v2 = vrot.slane %v8980_v12, %v10073_v41 }
 0x66e   : > { %v9012_v0 = vcombine.low %v8987_v2, %v8995_v42 }
 0x670   : > { %v9019_v31 = vrot.slane %v9012_v0, %v10075_v43 }
 0x67d   : > { %v8900_v27 = vpop.trf.xlu0  ;;  %v8868_v3 = vpop.trf.xlu1 }
 0x690   : > { %v8964_v34 = vpop.trf.xlu0  ;;  %v8932_v17 = vpop.trf.xlu1 }
 0x691   : > { %v9004_v49 = vcombine.low %v8900_v27, %v8964_v34  ;;  %v8996_v62 = vcombine.low %v8868_v3, %v8932_v17 }
 0x693   : > { %v9011_v1 = vrot.slane %v9004_v49, %v10073_v41  ;;  %v9003_v57 = vrot.slane %v8996_v62, %v10073_v41 }
 0x695   : > { %v9020_v35 = vcombine.low %v9003_v57, %v9011_v1 }
 0x697   : > { %v9027_v21 = vrot.slane %v9020_v35, %v10075_v43 }
 0x699   : > { %v9028_v8 = vcombine.low %v9019_v31, %v9027_v21  ;;  %v9029_v51 = vcombine.high %v9019_v31, %v9027_v21 }
 0x69b   : > { %v9030_v41 = vadd.f32 %v9028_v8, %v3962_v19  ;;  %v9031_v60 = vadd.f32 %v9029_v51, %v3962_v19 }
 0x69d   : > { %9032 = vst.msk [vmem:[%s323_s25] sm:$0xff] %vm2321_vm0, %v9030_v41  ;;  %9033 = vst.msk [vmem:[%s323_s25 + $0x8] sm:$0xff] %vm2321_vm0, %v9031_v60 }
 0x69e   : > { %9887 = shalt.err (!%p9884_p10)
}
 0x69f   : > { %s9888_s13 = scalar_lea.hbm %s11394_s7, 256  ;;  %s9892_s15 = scalar_lea.hbm %s11448_s5, 512 }
 0x6a0   : > { %p9889_p11 = scmp.ne.s32.totalorder %s11394_s7, %s9888_s13  ;;  %p9893_p0 = scmp.lt.s32.totalorder %s11394_s7, %s11448_s5 }
 0x6a1   : > { %p9894_p1 = scmp.lt.s32.totalorder %s9892_s15, %s9888_s13 }
 0x6a2   : > { %p9890_p12 = pnand %p9889_p11, %p10012_p6 }
 0x6a3   : > { %p9895_p2 = por %p9894_p1, %p9893_p0 }
 0x6a4   : > { %p9891_p13 = pneg %p9890_p12 }
 0x6a6   : > { %p9896_p3 = pnand %p9895_p2, %p9891_p13 }
 0x6a8   : > { %9899 = shalt.err (!%p9896_p3)
}
 0x6a9   : > { %s9940_s23 = smov 128   ;;  %s9941_s25 = smov 256  }
 0x6aa   : > { %s9942_s30 = smov 8  }
 0x6ab   : > { %9813 = dma.vmem_to_hbm [thread:$0]  (%p10012_p6), %s11396_s26, 256, %s11394_s7, %s11402_s22, %s9940_s23, %s9941_s25, %s9942_s30  }
 0x6ac PF: > { %s9062_s6 = sand.u32 1, %s9922_s18   ;;  %p9816_p4 = pnand %p9165_p9, %p10016_p8 }
 0x6ad   : > { %s9063_s14 = scalar_lea.sflag [#allocation4], %s9062_s6 }
 0x6ae   : > { %p9817_p5 = pneg %p9816_p4 }
 0x6b0   : > { %9917 = dma.done.wait (%p9817_p5), %s9063_s14, 256  }
 0x6b1   : > { %9919 = vsyncadd (%p9817_p5), %s9063_s14, 4294967040  ;;  %p15_p7 = scmp.ge.s32.totalorder %s9998_s24, 4   ;;  %s11605_s18 = smov %s9926_s19 }
 0x6b2   : > { %s11606_s19 = smov %s9930_s20  ;;  %s11607_s20 = smov %s10010_s27 }
 0x6b3   : > { %s11608_s21 = smov %s9998_s24  ;;  %17 = sbr.rel (!%p15_p7) target bundleno = 3 (0x3), region = 130 }
 0x6b8   :  { %9068 = vsyncpa [#allocation4], 1 }
 0x6b9   :  { %9070 = vsyncpa [#allocation4 + $0x1], 1 }

</bundles_post_ra>
